<compile_context>
chip_gen: v7x
topology: tpu7x:2x2x1
jax: 0.10.0
libtpu: 0.0.40
codegen_flags: <defaults>
</compile_context>

<pallas_src>
import numpy as np
import jax
import jax.numpy as jnp
from jax.experimental import pallas as pl
from jax.experimental.pallas import tpu as pltpu

# Full-f32 matmul precision everywhere so the XLA reference and the Mosaic
# kernel agree to ~1e-6 (TPU default matmul precision may be bf16).
jax.config.update("jax_default_matmul_precision", "highest")

# Problem sizes implied by the module-level padding mask.
B, T, D, H = 2, 3, 32, 4
DH = D // H          # 8
N = B * T            # 6   flattened (batch, seq) rows
G = B * H            # 8   flattened (batch, head) groups
GT = G * T           # 24  flattened (batch, head, seq) rows

# Module-level padding mask (True where the key position is padding).
_PAD_NP = (np.array([[1, 1, 0], [1, 1, 0]], dtype=np.int32) == 0)
PADDING_MASK = jnp.asarray(_PAD_NP)

_NEG_BIG = -1e30     # Python float -> literal inside NumPy consts only


def _build_constants():
    """Host-side constants that turn all head bookkeeping into matmuls.

    Row convention: r = (b*H + h)*T + q (head-major inside each batch), so the
    (GT, T) attention output reshapes to (B, H, T, T) for free.
    """
    E     = np.zeros((GT, N), np.float32)            # row replication (b,h,q) <- (b,q)
    MHEAD = np.zeros((GT, D), np.float32)            # head column-block selector
    MADD  = np.full((GT, N), _NEG_BIG, np.float32)   # 0 where same batch & key unpadded
    R     = np.zeros((N, GT), np.float32)            # head-sum (b,q) <- sum_h (b,h,q)
    SEL   = np.zeros((N, T), np.float32)             # key extraction (b,k) -> k
    for b in range(B):
        for h in range(H):
            for q in range(T):
                r = (b * H + h) * T + q
                E[r, b * T + q] = 1.0
                MHEAD[r, h * DH:(h + 1) * DH] = 1.0
                R[b * T + q, r] = 1.0
                for k in range(T):
                    if not _PAD_NP[b, k]:
                        MADD[r, b * T + k] = 0.0
    for b in range(B):
        for k in range(T):
            SEL[b * T + k, k] = 1.0
    return E, MHEAD, MADD, R, SEL


_CONSTS = tuple(jnp.asarray(c) for c in _build_constants())


def mha_kernel(q_ref, k_ref, v_ref,              # (N, D) each
               wq_ref, wk_ref, wv_ref, wo_ref,   # (D, D) each; wq pre-scaled by 1/sqrt(DH)
               e_ref, mhead_ref, madd_ref, r_ref, sel_ref,   # constants
               z_ref, a_ref):                    # (N, D), (GT, T)
    f32 = jnp.float32
    nt = (((1,), (1,)), ((), ()))   # A @ B^T (contract last dims), no materialized transpose

    # Projections (scale already folded into wq).
    qp = jnp.dot(q_ref[...], wq_ref[...], preferred_element_type=f32)      # (N, D)
    kp = jnp.dot(k_ref[...], wk_ref[...], preferred_element_type=f32)      # (N, D)
    vp = jnp.dot(v_ref[...], wv_ref[...], preferred_element_type=f32)      # (N, D)

    # Per-(batch,head) query rows: replicate (b,q) rows H times and keep only
    # the head-h column block, so the 32-wide contraction below is a per-head dot.
    qw = jnp.dot(e_ref[...], qp, preferred_element_type=f32) * mhead_ref[...]   # (GT, D)

    # Scores for every (b,h,q) row against every (b',k) key column; cross-batch
    # entries and padded keys are killed by the precomputed additive mask.
    s = jax.lax.dot_general(qw, kp, dimension_numbers=nt,
                            preferred_element_type=f32) + madd_ref[...]          # (GT, N)

    # Row softmax (masked entries underflow to exactly 0).
    m = jnp.max(s, axis=-1, keepdims=True)
    e = jnp.exp(s - m)
    inv = pl.reciprocal(jnp.sum(e, axis=-1, keepdims=True), approx=False)
    a = e * inv                                                                   # (GT, N)

    # Attention weights, lane-dense (GT, T): pick the own-batch key block
    # (off-batch entries are exactly zero, so a summing selector is exact).
    a_ref[...] = jnp.dot(a, sel_ref[...], preferred_element_type=f32)

    # Weighted values; keep only head-h columns, then sum over heads (R) to get
    # the (b, q, h*DH+d) layout without any transpose, and project with Wo^T.
    y = jnp.dot(a, vp, preferred_element_type=f32) * mhead_ref[...]              # (GT, D)
    zf = jnp.dot(r_ref[...], y, preferred_element_type=f32)                      # (N, D)
    z_ref[...] = jnp.dot(zf, wo_ref[...], preferred_element_type=f32)            # (N, D)


def prepare_params(wq, wk, wv, wo):
    """One-time host-side prep: pre-transpose weights (y = x @ W^T) and fold
    the 1/sqrt(DH) score scale into the query projection."""
    scale = 1.0 / float(np.sqrt(DH))
    return (jnp.asarray(wq.T * scale, jnp.float32),
            jnp.asarray(wk.T, jnp.float32),
            jnp.asarray(wv.T, jnp.float32),
            jnp.asarray(wo.T, jnp.float32))


def _full(shape):
    return pl.BlockSpec(shape, lambda i: (0, 0))


@jax.jit
def custom_multihead_attention(query, key, value, key_padding_mask, params):
    """Mirrors CustomMultiheadAttention.forward.  Like the PyTorch code, the
    key_padding_mask argument is ignored in favour of the module-level mask."""
    del key_padding_mask  # intentionally unused (matches the original forward)
    b, t, d = query.shape
    assert (b, t, d) == (B, T, D), "kernel is specialized to (B,T,D)=(2,3,32)"
    wq_s, wk_t, wv_t, wo_t = params
    e_m, mhead_m, madd_m, r_m, sel_m = _CONSTS

    q2 = query.reshape(b * t, d)   # free leading-dim reshapes, no concat / HBM copy
    k2 = key.reshape(b * t, d)
    v2 = value.reshape(b * t, d)

    z_flat, a_flat = pl.pallas_call(
        mha_kernel,
        out_shape=(jax.ShapeDtypeStruct((N, D), jnp.float32),
                   jax.ShapeDtypeStruct((GT, T), jnp.float32)),
        grid_spec=pltpu.PrefetchScalarGridSpec(
            num_scalar_prefetch=0,
            grid=(1,),   # whole problem in one grid step (overhead-bound size)
            in_specs=[
                _full((N, D)), _full((N, D)), _full((N, D)),            # q, k, v
                _full((D, D)), _full((D, D)), _full((D, D)), _full((D, D)),  # weights
                _full((GT, N)), _full((GT, D)), _full((GT, N)),         # E, M_head, mask_add
                _full((N, GT)), _full((N, T)),                          # R, Sel
            ],
            out_specs=[_full((N, D)), _full((GT, T))],
        ),
        compiler_params=pltpu.CompilerParams(dimension_semantics=("arbitrary",)),
    )(q2, k2, v2, wq_s, wk_t, wv_t, wo_t, e_m, mhead_m, madd_m, r_m, sel_m)

    # Free leading-dim reshapes back to the PyTorch output layout.
    return z_flat.reshape(b, t, d), a_flat.reshape(b, H, t, t)


def reference_forward(query, key, value, raw_weights):
    """Pure-JAX replica of the PyTorch forward (raw, untransposed weights)."""
    wq, wk, wv, wo = raw_weights
    b, t, _ = query.shape
    Q = (query @ wq.T).reshape(b, t, H, DH).transpose(0, 2, 1, 3)
    K = (key @ wk.T).reshape(b, t, H, DH).transpose(0, 2, 1, 3)
    V = (value @ wv.T).reshape(b, t, H, DH).transpose(0, 2, 1, 3)
    S = jnp.einsum('bhqd,bhkd->bhqk', Q, K) / jnp.sqrt(jnp.float32(DH))
    S = S + jnp.where(PADDING_MASK, -jnp.inf, 0.0)[:, None, None, :]
    A = jax.nn.softmax(S, axis=-1)
    Z = jnp.einsum('bhqk,bhkd->bhqd', A, V).transpose(0, 2, 1, 3).reshape(b, t, D)
    return Z @ wo.T, A


if __name__ == "__main__":
    key0 = jax.random.PRNGKey(0)
    kq, kk, kv, k1, k2, k3, k4 = jax.random.split(key0, 7)

    # Deterministic parameter init (Linear(d, d, bias=False) style uniform).
    bound = float(1.0 / np.sqrt(D))
    Wq = jax.random.uniform(k1, (D, D), jnp.float32, -bound, bound)
    Wk = jax.random.uniform(k2, (D, D), jnp.float32, -bound, bound)
    Wv = jax.random.uniform(k3, (D, D), jnp.float32, -bound, bound)
    Wo = jax.random.uniform(k4, (D, D), jnp.float32, -bound, bound)
    params = prepare_params(Wq, Wk, Wv, Wo)   # one-time prep, outside the call path

    query = jax.random.normal(kq, (B, T, D), jnp.float32)
    key_in = jax.random.normal(kk, (B, T, D), jnp.float32)
    value = jax.random.normal(kv, (B, T, D), jnp.float32)
    key_padding_mask = PADDING_MASK   # passed but ignored, as in the PyTorch forward

    z, a = custom_multihead_attention(query, key_in, value, key_padding_mask, params)
    jax.block_until_ready((z, a))

    z_ref, a_ref = reference_forward(query, key_in, value, (Wq, Wk, Wv, Wo))
    assert z.shape == (B, T, D) and a.shape == (B, H, T, T)
    assert jnp.allclose(z, z_ref, atol=1e-5, rtol=1e-5)
    assert jnp.allclose(a, a_ref, atol=1e-5, rtol=1e-5)

    print("KERNEL_OK")
</pallas_src>

<mosaic_0001>
module attributes {stable_mosaic.version = 11 : i64} {
  func.func @mha_kernel(%arg0: i32, %arg1: memref<6x32xf32, #tpu.memory_space<vmem>>, %arg2: memref<6x32xf32, #tpu.memory_space<vmem>>, %arg3: memref<6x32xf32, #tpu.memory_space<vmem>>, %arg4: memref<32x32xf32, #tpu.memory_space<vmem>>, %arg5: memref<32x32xf32, #tpu.memory_space<vmem>>, %arg6: memref<32x32xf32, #tpu.memory_space<vmem>>, %arg7: memref<32x32xf32, #tpu.memory_space<vmem>>, %arg8: memref<24x6xf32, #tpu.memory_space<vmem>>, %arg9: memref<24x32xf32, #tpu.memory_space<vmem>>, %arg10: memref<24x6xf32, #tpu.memory_space<vmem>>, %arg11: memref<6x24xf32, #tpu.memory_space<vmem>>, %arg12: memref<6x3xf32, #tpu.memory_space<vmem>>, %arg13: memref<6x32xf32, #tpu.memory_space<vmem>>, %arg14: memref<24x3xf32, #tpu.memory_space<vmem>>) attributes {dimension_semantics = [#tpu.dimension_semantics<arbitrary>], iteration_bounds = array<i64: 1>, scalar_prefetch = 0 : i64, scratch_operands = 0 : i64, tpu.core_type = #tpu.core_type<tc>, window_params = [{pipeline_mode = #tpu.pipeline_mode<synchronous>, transform_indices = @transform_0, window_bounds = array<i64: 6, 32>}, {pipeline_mode = #tpu.pipeline_mode<synchronous>, transform_indices = @transform_1, window_bounds = array<i64: 6, 32>}, {pipeline_mode = #tpu.pipeline_mode<synchronous>, transform_indices = @transform_2, window_bounds = array<i64: 6, 32>}, {pipeline_mode = #tpu.pipeline_mode<synchronous>, transform_indices = @transform_3, window_bounds = array<i64: 32, 32>}, {pipeline_mode = #tpu.pipeline_mode<synchronous>, transform_indices = @transform_4, window_bounds = array<i64: 32, 32>}, {pipeline_mode = #tpu.pipeline_mode<synchronous>, transform_indices = @transform_5, window_bounds = array<i64: 32, 32>}, {pipeline_mode = #tpu.pipeline_mode<synchronous>, transform_indices = @transform_6, window_bounds = array<i64: 32, 32>}, {pipeline_mode = #tpu.pipeline_mode<synchronous>, transform_indices = @transform_7, window_bounds = array<i64: 24, 6>}, {pipeline_mode = #tpu.pipeline_mode<synchronous>, transform_indices = @transform_8, window_bounds = array<i64: 24, 32>}, {pipeline_mode = #tpu.pipeline_mode<synchronous>, transform_indices = @transform_9, window_bounds = array<i64: 24, 6>}, {pipeline_mode = #tpu.pipeline_mode<synchronous>, transform_indices = @transform_10, window_bounds = array<i64: 6, 24>}, {pipeline_mode = #tpu.pipeline_mode<synchronous>, transform_indices = @transform_11, window_bounds = array<i64: 6, 3>}, {pipeline_mode = #tpu.pipeline_mode<synchronous>, transform_indices = @transform_12, window_bounds = array<i64: 6, 32>}, {pipeline_mode = #tpu.pipeline_mode<synchronous>, transform_indices = @transform_13, window_bounds = array<i64: 24, 3>}]} {
    %c0 = arith.constant 0 : index
    %c0_0 = arith.constant 0 : index
    %0 = vector.load %arg1[%c0, %c0_0] : memref<6x32xf32, #tpu.memory_space<vmem>>, vector<6x32xf32>
    %c0_1 = arith.constant 0 : index
    %c0_2 = arith.constant 0 : index
    %1 = vector.load %arg4[%c0_1, %c0_2] : memref<32x32xf32, #tpu.memory_space<vmem>>, vector<32x32xf32>
    %cst = arith.constant dense<0.000000e+00> : vector<6x32xf32>
    %2 = tpu.matmul %0, %1, %cst {dimension_numbers = #tpu.dot_dimension_numbers<[1], [0], [0], [1], [0, 0, 1, 1], [], []>, precision = #tpu.contract_precision<fp32>} : vector<6x32xf32>, vector<32x32xf32>, vector<6x32xf32> -> vector<6x32xf32>
    %c0_3 = arith.constant 0 : index
    %c0_4 = arith.constant 0 : index
    %3 = vector.load %arg2[%c0_3, %c0_4] : memref<6x32xf32, #tpu.memory_space<vmem>>, vector<6x32xf32>
    %c0_5 = arith.constant 0 : index
    %c0_6 = arith.constant 0 : index
    %4 = vector.load %arg5[%c0_5, %c0_6] : memref<32x32xf32, #tpu.memory_space<vmem>>, vector<32x32xf32>
    %cst_7 = arith.constant dense<0.000000e+00> : vector<6x32xf32>
    %5 = tpu.matmul %3, %4, %cst_7 {dimension_numbers = #tpu.dot_dimension_numbers<[1], [0], [0], [1], [0, 0, 1, 1], [], []>, precision = #tpu.contract_precision<fp32>} : vector<6x32xf32>, vector<32x32xf32>, vector<6x32xf32> -> vector<6x32xf32>
    %c0_8 = arith.constant 0 : index
    %c0_9 = arith.constant 0 : index
    %6 = vector.load %arg3[%c0_8, %c0_9] : memref<6x32xf32, #tpu.memory_space<vmem>>, vector<6x32xf32>
    %c0_10 = arith.constant 0 : index
    %c0_11 = arith.constant 0 : index
    %7 = vector.load %arg6[%c0_10, %c0_11] : memref<32x32xf32, #tpu.memory_space<vmem>>, vector<32x32xf32>
    %cst_12 = arith.constant dense<0.000000e+00> : vector<6x32xf32>
    %8 = tpu.matmul %6, %7, %cst_12 {dimension_numbers = #tpu.dot_dimension_numbers<[1], [0], [0], [1], [0, 0, 1, 1], [], []>, precision = #tpu.contract_precision<fp32>} : vector<6x32xf32>, vector<32x32xf32>, vector<6x32xf32> -> vector<6x32xf32>
    %c0_13 = arith.constant 0 : index
    %c0_14 = arith.constant 0 : index
    %9 = vector.load %arg8[%c0_13, %c0_14] : memref<24x6xf32, #tpu.memory_space<vmem>>, vector<24x6xf32>
    %cst_15 = arith.constant dense<0.000000e+00> : vector<24x32xf32>
    %10 = tpu.matmul %9, %2, %cst_15 {dimension_numbers = #tpu.dot_dimension_numbers<[1], [0], [0], [1], [0, 0, 1, 1], [], []>, precision = #tpu.contract_precision<fp32>} : vector<24x6xf32>, vector<6x32xf32>, vector<24x32xf32> -> vector<24x32xf32>
    %c0_16 = arith.constant 0 : index
    %c0_17 = arith.constant 0 : index
    %11 = vector.load %arg9[%c0_16, %c0_17] : memref<24x32xf32, #tpu.memory_space<vmem>>, vector<24x32xf32>
    %12 = arith.mulf %10, %11 : vector<24x32xf32>
    %cst_18 = arith.constant dense<0.000000e+00> : vector<24x6xf32>
    %13 = tpu.matmul %12, %5, %cst_18 {dimension_numbers = #tpu.dot_dimension_numbers<[1], [1], [0], [0], [0, 0, 1, 0], [], []>, precision = #tpu.contract_precision<fp32>} : vector<24x32xf32>, vector<6x32xf32>, vector<24x6xf32> -> vector<24x6xf32>
    %c0_19 = arith.constant 0 : index
    %c0_20 = arith.constant 0 : index
    %14 = vector.load %arg10[%c0_19, %c0_20] : memref<24x6xf32, #tpu.memory_space<vmem>>, vector<24x6xf32>
    %15 = arith.addf %13, %14 : vector<24x6xf32>
    %cst_21 = arith.constant dense<0xFF800000> : vector<24xf32>
    %16 = vector.multi_reduction <maximumf>, %15, %cst_21 [1] : vector<24x6xf32> to vector<24xf32>
    %17 = vector.shape_cast %16 : vector<24xf32> to vector<24x1xf32>
    %18 = vector.broadcast %17 : vector<24x1xf32> to vector<24x6xf32>
    %19 = arith.subf %15, %18 : vector<24x6xf32>
    %20 = math.exp %19 : vector<24x6xf32>
    %cst_22 = arith.constant dense<0.000000e+00> : vector<24xf32>
    %21 = vector.multi_reduction <add>, %20, %cst_22 [1] : vector<24x6xf32> to vector<24xf32>
    %22 = vector.shape_cast %21 : vector<24xf32> to vector<24x1xf32>
    %23 = tpu.reciprocal %22 : vector<24x1xf32> -> vector<24x1xf32>
    %24 = vector.broadcast %23 : vector<24x1xf32> to vector<24x6xf32>
    %25 = arith.mulf %20, %24 : vector<24x6xf32>
    %c0_23 = arith.constant 0 : index
    %c0_24 = arith.constant 0 : index
    %26 = vector.load %arg12[%c0_23, %c0_24] : memref<6x3xf32, #tpu.memory_space<vmem>>, vector<6x3xf32>
    %cst_25 = arith.constant dense<0.000000e+00> : vector<24x3xf32>
    %27 = tpu.matmul %25, %26, %cst_25 {dimension_numbers = #tpu.dot_dimension_numbers<[1], [0], [0], [1], [0, 0, 1, 1], [], []>, precision = #tpu.contract_precision<fp32>} : vector<24x6xf32>, vector<6x3xf32>, vector<24x3xf32> -> vector<24x3xf32>
    %c0_26 = arith.constant 0 : index
    %c0_27 = arith.constant 0 : index
    %28 = vector.load %arg14[%c0_26, %c0_27] : memref<24x3xf32, #tpu.memory_space<vmem>>, vector<24x3xf32>
    tpu.vector_store %arg14[%c0_26, %c0_27], %27 {strides = array<i32>} : memref<24x3xf32, #tpu.memory_space<vmem>>, vector<24x3xf32>,
    %cst_28 = arith.constant dense<0.000000e+00> : vector<24x32xf32>
    %29 = tpu.matmul %25, %8, %cst_28 {dimension_numbers = #tpu.dot_dimension_numbers<[1], [0], [0], [1], [0, 0, 1, 1], [], []>, precision = #tpu.contract_precision<fp32>} : vector<24x6xf32>, vector<6x32xf32>, vector<24x32xf32> -> vector<24x32xf32>
    %c0_29 = arith.constant 0 : index
    %c0_30 = arith.constant 0 : index
    %30 = vector.load %arg9[%c0_29, %c0_30] : memref<24x32xf32, #tpu.memory_space<vmem>>, vector<24x32xf32>
    %31 = arith.mulf %29, %30 : vector<24x32xf32>
    %c0_31 = arith.constant 0 : index
    %c0_32 = arith.constant 0 : index
    %32 = vector.load %arg11[%c0_31, %c0_32] : memref<6x24xf32, #tpu.memory_space<vmem>>, vector<6x24xf32>
    %cst_33 = arith.constant dense<0.000000e+00> : vector<6x32xf32>
    %33 = tpu.matmul %32, %31, %cst_33 {dimension_numbers = #tpu.dot_dimension_numbers<[1], [0], [0], [1], [0, 0, 1, 1], [], []>, precision = #tpu.contract_precision<fp32>} : vector<6x24xf32>, vector<24x32xf32>, vector<6x32xf32> -> vector<6x32xf32>
    %c0_34 = arith.constant 0 : index
    %c0_35 = arith.constant 0 : index
    %34 = vector.load %arg7[%c0_34, %c0_35] : memref<32x32xf32, #tpu.memory_space<vmem>>, vector<32x32xf32>
    %cst_36 = arith.constant dense<0.000000e+00> : vector<6x32xf32>
    %35 = tpu.matmul %33, %34, %cst_36 {dimension_numbers = #tpu.dot_dimension_numbers<[1], [0], [0], [1], [0, 0, 1, 1], [], []>, precision = #tpu.contract_precision<fp32>} : vector<6x32xf32>, vector<32x32xf32>, vector<6x32xf32> -> vector<6x32xf32>
    %c0_37 = arith.constant 0 : index
    %c0_38 = arith.constant 0 : index
    %36 = vector.load %arg13[%c0_37, %c0_38] : memref<6x32xf32, #tpu.memory_space<vmem>>, vector<6x32xf32>
    tpu.vector_store %arg13[%c0_37, %c0_38], %35 {strides = array<i32>} : memref<6x32xf32, #tpu.memory_space<vmem>>, vector<6x32xf32>,
    return
  }
  func.func @transform_0(%arg0: i32) -> (i32, i32) {
    %c0_i32 = arith.constant 0 : i32
    %c0_i32_0 = arith.constant 0 : i32
    %c0_i32_1 = arith.constant 0 : i32
    return %c0_i32, %c0_i32_0 : i32, i32
  }
  func.func @transform_1(%arg0: i32) -> (i32, i32) {
    %c0_i32 = arith.constant 0 : i32
    %c0_i32_0 = arith.constant 0 : i32
    %c0_i32_1 = arith.constant 0 : i32
    return %c0_i32, %c0_i32_0 : i32, i32
  }
  func.func @transform_2(%arg0: i32) -> (i32, i32) {
    %c0_i32 = arith.constant 0 : i32
    %c0_i32_0 = arith.constant 0 : i32
    %c0_i32_1 = arith.constant 0 : i32
    return %c0_i32, %c0_i32_0 : i32, i32
  }
  func.func @transform_3(%arg0: i32) -> (i32, i32) {
    %c0_i32 = arith.constant 0 : i32
    %c0_i32_0 = arith.constant 0 : i32
    %c0_i32_1 = arith.constant 0 : i32
    return %c0_i32, %c0_i32_0 : i32, i32
  }
  func.func @transform_4(%arg0: i32) -> (i32, i32) {
    %c0_i32 = arith.constant 0 : i32
    %c0_i32_0 = arith.constant 0 : i32
    %c0_i32_1 = arith.constant 0 : i32
    return %c0_i32, %c0_i32_0 : i32, i32
  }
  func.func @transform_5(%arg0: i32) -> (i32, i32) {
    %c0_i32 = arith.constant 0 : i32
    %c0_i32_0 = arith.constant 0 : i32
    %c0_i32_1 = arith.constant 0 : i32
    return %c0_i32, %c0_i32_0 : i32, i32
  }
  func.func @transform_6(%arg0: i32) -> (i32, i32) {
    %c0_i32 = arith.constant 0 : i32
    %c0_i32_0 = arith.constant 0 : i32
    %c0_i32_1 = arith.constant 0 : i32
    return %c0_i32, %c0_i32_0 : i32, i32
  }
  func.func @transform_7(%arg0: i32) -> (i32, i32) {
    %c0_i32 = arith.constant 0 : i32
    %c0_i32_0 = arith.constant 0 : i32
    %c0_i32_1 = arith.constant 0 : i32
    return %c0_i32, %c0_i32_0 : i32, i32
  }
  func.func @transform_8(%arg0: i32) -> (i32, i32) {
    %c0_i32 = arith.constant 0 : i32
    %c0_i32_0 = arith.constant 0 : i32
    %c0_i32_1 = arith.constant 0 : i32
    return %c0_i32, %c0_i32_0 : i32, i32
  }
  func.func @transform_9(%arg0: i32) -> (i32, i32) {
    %c0_i32 = arith.constant 0 : i32
    %c0_i32_0 = arith.constant 0 : i32
    %c0_i32_1 = arith.constant 0 : i32
    return %c0_i32, %c0_i32_0 : i32, i32
  }
  func.func @transform_10(%arg0: i32) -> (i32, i32) {
    %c0_i32 = arith.constant 0 : i32
    %c0_i32_0 = arith.constant 0 : i32
    %c0_i32_1 = arith.constant 0 : i32
    return %c0_i32, %c0_i32_0 : i32, i32
  }
  func.func @transform_11(%arg0: i32) -> (i32, i32) {
    %c0_i32 = arith.constant 0 : i32
    %c0_i32_0 = arith.constant 0 : i32
    %c0_i32_1 = arith.constant 0 : i32
    return %c0_i32, %c0_i32_0 : i32, i32
  }
  func.func @transform_12(%arg0: i32) -> (i32, i32) {
    %c0_i32 = arith.constant 0 : i32
    %c0_i32_0 = arith.constant 0 : i32
    %c0_i32_1 = arith.constant 0 : i32
    return %c0_i32, %c0_i32_0 : i32, i32
  }
  func.func @transform_13(%arg0: i32) -> (i32, i32) {
    %c0_i32 = arith.constant 0 : i32
    %c0_i32_0 = arith.constant 0 : i32
    %c0_i32_1 = arith.constant 0 : i32
    return %c0_i32, %c0_i32_0 : i32, i32
  }
}

</mosaic_0001>

<bundles_post_ra>
// kernel: custom_multihead_attention.1
= control target key start
LH: loop header
LB: loop body
LE: loop exit
PB: predicated region body
PF: predicated region fallthrough
CT: control target
= control target key end

     0   :  { %19 = vsyncpa [#allocation3], 0  ;;  %s6866_s0 = inlined_call_operand.vmem [shape: f32[6,32], index: 0, kind: input, shape index: {}]   ;;  %s6867_s1 = inlined_call_operand.vmem [shape: f32[6,32], index: 1, kind: input, shape index: {}]   ;;  %s6868_s2 = inlined_call_operand.vmem [shape: f32[6,32], index: 2, kind: input, shape index: {}]   ;;  %s6869_s3 = inlined_call_operand.vmem [shape: f32[32,32], index: 3, kind: input, shape index: {}]   ;;  %s6870_s4 = inlined_call_operand.vmem [shape: f32[32,32], index: 4, kind: input, shape index: {}]   ;;  %s6871_s5 = inlined_call_operand.vmem [shape: f32[32,32], index: 5, kind: input, shape index: {}]   ;;  %s6872_s6 = inlined_call_operand.hbm [shape: f32[32,32], index: 6, kind: input, shape index: {}]   ;;  %s6873_s7 = inlined_call_operand.hbm [shape: f32[24,6], index: 7, kind: input, shape index: {}]   ;;  %s6874_s8 = inlined_call_operand.hbm [shape: f32[24,32], index: 8, kind: input, shape index: {}]   ;;  %s6875_s9 = inlined_call_operand.vmem [shape: f32[24,6], index: 9, kind: input, shape index: {}]   ;;  %s6876_s10 = inlined_call_operand.hbm [shape: f32[6,24], index: 10, kind: input, shape index: {}]   ;;  %s6877_s11 = inlined_call_operand.vmem [shape: f32[6,3], index: 11, kind: input, shape index: {}]   ;;  %s6878_s12 = inlined_call_operand.vmem [shape: f32[6,32], index: 12, kind: output, shape index: {0}]   ;;  %s6879_s13 = inlined_call_operand.vmem [shape: f32[24,3], index: 13, kind: output, shape index: {1}]  }
   0x1   :  { %20 = vsyncpa [#allocation5], 0 }
   0x2   :  { %21 = vsyncpa [#allocation8], 0  ;;  %s6051_s25 = smov [#allocation4]   ;;  %s6052_s27 = smov [#allocation2]  }
   0x3   :  { %s51_s26 = sshll.u32 %s6051_s25, 4  ;;  %s39_s28 = sshll.u32 %s6052_s27, 4  ;;  %s52_s26 = int_to_ptr.vmem [resolvable:$true] %s51_s26  ;;  %s6130_s28 = int_to_ptr.vmem [resolvable:$true] %s39_s28 }
   0x4   :  { %s5957_s14 = scalar_lea.hbm %s6873_s7, 384 }
   0x5   :  { %p5958_p0 = scmp.ne.s32.totalorder %s6873_s7, %s5957_s14  ;;  %p5961_p1 = scmp.lt.u32.totalorder %s5957_s14, %s6873_s7 }
   0x7   :  { %p5963_p2 = pnand %p5961_p1, %p5958_p0 }
   0x9   :  { %5966 = shalt.err (!%p5963_p2)
}
   0xa   :  { %s5967_s19 = scalar_lea.vmem %s52_s26, 384  ;;  %p5972_p4 = scmp.lt.s32.totalorder %s52_s26, %s52_s26 }
   0xb   :  { %p5968_p3 = scmp.ne.s32.totalorder %s52_s26, %s5967_s19  ;;  %p5973_p5 = scmp.lt.s32.totalorder %s5967_s19, %s5967_s19 }
   0xd   :  { %p5974_p6 = por %p5973_p5, %p5972_p4 }
   0xf   :  { %p5975_p7 = pnand %p5974_p6, %p5968_p3 }
  0x11   :  { %5978 = shalt.err (!%p5975_p7)
}
  0x12   :  { %s6053_s20 = smov 128   ;;  %s6054_s21 = smov 8  }
  0x13   :  { %57 = dma.hbm_to_vmem [thread:$0]  %s6873_s7, 384, %s52_s26, [#allocation5], %s6053_s20, %s6053_s20, %s6054_s21  }
  0x14   :  { %s5979_s27 = scalar_lea.hbm %s6872_s6, 512 }
  0x15   :  { %p5980_p8 = scmp.ne.s32.totalorder %s6872_s6, %s5979_s27  ;;  %p5983_p9 = scmp.lt.u32.totalorder %s5979_s27, %s6872_s6 }
  0x17   :  { %p5985_p10 = pnand %p5983_p9, %p5980_p8 }
  0x19   :  { %5988 = shalt.err (!%p5985_p10)
}
  0x1a   :  { %s5989_s16 = scalar_lea.vmem %s6130_s28, 512  ;;  %p5994_p12 = scmp.lt.s32.totalorder %s6130_s28, %s6130_s28 }
  0x1b   :  { %p5990_p11 = scmp.ne.s32.totalorder %s6130_s28, %s5989_s16  ;;  %p5995_p13 = scmp.lt.s32.totalorder %s5989_s16, %s5989_s16 }
  0x1d   :  { %p5996_p0 = por %p5995_p13, %p5994_p12 }
  0x1f   :  { %p5997_p1 = pnand %p5996_p0, %p5990_p11 }
  0x21   :  { %6000 = shalt.err (!%p5997_p1)
}
  0x22   :  { %45 = dma.hbm_to_vmem [thread:$0]  %s6872_s6, 512, %s6130_s28, [#allocation3], %s6053_s20, %s6053_s20, %s6054_s21  }
  0x23   :  { %s6055_s17 = smov [#allocation6]   ;;  %s6056_s19 = smov [#allocation7]  }
  0x24   :  { %s63_s18 = sshll.u32 %s6055_s17, 4  ;;  %s78_s22 = sshll.u32 %s6056_s19, 4  ;;  %s64_s18 = int_to_ptr.vmem [resolvable:$true] %s63_s18  ;;  %s79_s22 = int_to_ptr.vmem [resolvable:$true] %s78_s22 }
  0x25   :  { %s6001_s25 = scalar_lea.hbm %s6874_s8, 384 }
  0x26   :  { %p6002_p2 = scmp.ne.s32.totalorder %s6874_s8, %s6001_s25  ;;  %p6005_p3 = scmp.lt.u32.totalorder %s6001_s25, %s6874_s8 }
  0x28   :  { %p6007_p4 = pnand %p6005_p3, %p6002_p2 }
  0x2a   :  { %6010 = shalt.err (!%p6007_p4)
}
  0x2b   :  { %s6011_s6 = scalar_lea.vmem %s64_s18, 384  ;;  %p6016_p6 = scmp.lt.s32.totalorder %s64_s18, %s64_s18 }
  0x2c   :  { %p6012_p5 = scmp.ne.s32.totalorder %s64_s18, %s6011_s6  ;;  %p6017_p7 = scmp.lt.s32.totalorder %s6011_s6, %s6011_s6 }
  0x2e   :  { %p6018_p8 = por %p6017_p7, %p6016_p6 }
  0x30   :  { %p6019_p9 = pnand %p6018_p8, %p6012_p5 }
  0x32   :  { %6022 = shalt.err (!%p6019_p9)
}
  0x33   :  { %69 = dma.hbm_to_vmem [thread:$0]  %s6874_s8, 384, %s64_s18, [#allocation5], %s6053_s20, %s6053_s20, %s6054_s21  }
  0x34   :  { %s6023_s26 = scalar_lea.hbm %s6876_s10, 128 }
  0x35   :  { %p6024_p10 = scmp.ne.s32.totalorder %s6876_s10, %s6023_s26  ;;  %p6027_p11 = scmp.lt.u32.totalorder %s6023_s26, %s6876_s10 }
  0x37   :  { %p6029_p12 = pnand %p6027_p11, %p6024_p10 }
  0x39   :  { %6032 = shalt.err (!%p6029_p12)
}
  0x3a   :  { %s6033_s25 = scalar_lea.vmem %s79_s22, 128  ;;  %p6038_p0 = scmp.lt.s32.totalorder %s79_s22, %s79_s22 }
  0x3b   :  { %p6034_p13 = scmp.ne.s32.totalorder %s79_s22, %s6033_s25  ;;  %p6039_p1 = scmp.lt.s32.totalorder %s6033_s25, %s6033_s25 }
  0x3d   :  { %p6040_p2 = por %p6039_p1, %p6038_p0 }
  0x3f   :  { %p6041_p3 = pnand %p6040_p2, %p6034_p13 }
  0x41   :  { %6044 = shalt.err (!%p6041_p3)
}
  0x42   :  { %81 = dma.hbm_to_vmem [thread:$0]  %s6876_s10, 128, %s79_s22, [#allocation8]  }
  0x43   :  { %6045 = dma.done.wait [#allocation3], 512  }
  0x44   :  { %6046 = vsyncadd [#allocation3], 4294966784 }
  0x45   :  { %6047 = dma.done.wait [#allocation5], 768  }
  0x46   :  { %6048 = vsyncadd [#allocation5], 4294966528 }
  0x47   :  { %6049 = dma.done.wait [#allocation8], 128  }
  0x48   :  { %6050 = vsyncadd [#allocation8], 4294967168  ;;  %v6057_v0 = vmov 0.0|0.0   ;;  %vm6058_vm0 = vmmov 0   ;;  %v6059_v1 = vmov 0.0   ;;  %vm101_vm1 = vcmask 261120  }
  0x49   :  { %5605 = vmatprep.subr.bf16.mxu0 %v6057_v0  ;;  %5031 = vmatprep.mubr.msk.f32.mxu0 %vm6058_vm0, %v6059_v1  ;;  %v97_v2 = vld [vmem:[%s6869_s3] sm:$0xff]  ;;  %v98_v3 = vld [vmem:[%s6869_s3 + $0x8] sm:$0xff]  ;;  %v99_v4 = vld [vmem:[%s6869_s3 + $0x10] sm:$0xff]  ;;  %vm1579_vm2 = vcmask 48128   ;;  %vm1589_vm3 = vcmask 1045504   ;;  %vm3802_vm4 = vcmask 195584  }
  0x4a   :  { %5641 = vmatprep.subr.bf16.mxu1 %v6057_v0  ;;  %5097 = vmatprep.mubr.msk.f32.mxu1 %vm6058_vm0, %v6059_v1  ;;  %v106_v5 = vand.u32 4294901760, %v97_v2  ;;  %v109_v6 = vand.u32 4294901760, %v98_v3  ;;  %v100_v7 = vld [vmem:[%s6869_s3 + $0x18] sm:$0xff]  ;;  %v112_v8 = vand.u32 4294901760, %v99_v4  ;;  %v96_v9 = vld [vmem:[%s6866_s0] sm:$0x3f] }
  0x4b   :  { %v115_v10 = vand.u32 4294901760, %v100_v7  ;;  %v103_v11 = vsel %vm101_vm1, %v96_v9, 0  ;;  %v591_v12 = vld [vmem:[%s6870_s4] sm:$0xff]  ;;  %v592_v17 = vld [vmem:[%s6870_s4 + $0x8] sm:$0xff]  ;;  %v593_v31 = vld [vmem:[%s6870_s4 + $0x10] sm:$0xff]  ;;  %vm3256_vm5 = vcmask 23552  }
  0x4c   :  { %v6219_v13 = vpack.c.bf16 %v109_v6, %v106_v5  ;;  %v6221_v14 = vsub.f32 %v97_v2, %v106_v5  ;;  %v6223_v15 = vsub.f32 %v98_v3, %v109_v6  ;;  %v6225_v16 = vsub.f32 %v99_v4, %v112_v8  ;;  %v594_v35 = vld [vmem:[%s6870_s4 + $0x18] sm:$0xff]  ;;  %v590_v36 = vld [vmem:[%s6867_s1] sm:$0x3f] }
  0x4d   :  { %v6230_v18 = vsub.f32 %v100_v7, %v115_v10  ;;  %v6232_v19 = vand.u32 4294901760, %v103_v11  ;;  %v599_v20 = vand.u32 4294901760, %v591_v12  ;;  %v6235_v21 = vpack.c.bf16 %v115_v10, %v112_v8 }
  0x4e   :  { %5607 = vmatpush3.bf16.msra.mxu0 %v6219_v13  ;;  %v187_v22 = vand.u32 4294901760, %v6221_v14  ;;  %v194_v23 = vand.u32 4294901760, %v6223_v15  ;;  %v201_v24 = vand.u32 4294901760, %v6225_v16  ;;  %v602_v27 = vand.u32 4294901760, %v592_v17 }
  0x4f   :  { %5608 = vmatprep.subr.bf16.mxu0 %v6057_v0  ;;  %v6242_v25 = vsub.f32 %v103_v11, %v6232_v19  ;;  %v208_v26 = vand.u32 4294901760, %v6230_v18  ;;  %v6270_v40 = vsub.f32 %v591_v12, %v599_v20  ;;  %v605_v44 = vand.u32 4294901760, %v593_v31 }
  0x50   :  { %v188_v28 = vsub.f32 %v6221_v14, %v187_v22  ;;  %v195_v29 = vsub.f32 %v6223_v15, %v194_v23  ;;  %v202_v30 = vsub.f32 %v6225_v16, %v201_v24  ;;  %v6261_v34 = vpack.c.bf16 %v602_v27, %v599_v20 }
  0x51   :  { %v176_v32 = vand.u32 4294901760, %v6242_v25  ;;  %v209_v33 = vsub.f32 %v6230_v18, %v208_v26  ;;  %v6277_v43 = vsub.f32 %v592_v17, %v602_v27  ;;  %v608_v46 = vand.u32 4294901760, %v594_v35  ;;  %v1084_v27 = vld [vmem:[%s6871_s5] sm:$0xff] }
  0x52   :  { %5610 = vmatpush3.bf16.msra.mxu0 %v6235_v21  ;;  %v189_v37 = vand.u32 4294901760, %v188_v28  ;;  %v196_v38 = vand.u32 4294901760, %v195_v29  ;;  %v203_v39 = vand.u32 4294901760, %v202_v30  ;;  %5643 = vmatpush3.bf16.msra.mxu1 %v6261_v34  ;;  %v596_v47 = vsel %vm101_vm1, %v590_v36, 0  ;;  %v1085_v28 = vld [vmem:[%s6871_s5 + $0x8] sm:$0xff] }
  0x53   :  { %v177_v41 = vsub.f32 %v6242_v25, %v176_v32  ;;  %5611 = vmatprep.subr.bf16.mxu0 %v6057_v0  ;;  %v210_v42 = vand.u32 4294901760, %v209_v33  ;;  %5644 = vmatprep.subr.bf16.mxu1 %v6057_v0  ;;  %v680_v48 = vand.u32 4294901760, %v6270_v40  ;;  %v6282_v50 = vsub.f32 %v593_v31, %v605_v44  ;;  %v1083_v29 = vld [vmem:[%s6868_s2] sm:$0x3f] }
  0x54   :  { %v5612_v45 = vpack.c.bf16 %v196_v38, %v189_v37  ;;  %v6284_v51 = vand.u32 4294901760, %v596_v47  ;;  %v6286_v52 = vpack.c.bf16 %v608_v46, %v605_v44  ;;  %v6288_v53 = vsub.f32 %v594_v35, %v608_v46 }
  0x55   :  { %v178_v49 = vand.u32 4294901760, %v177_v41  ;;  %v681_v54 = vsub.f32 %v6270_v40, %v680_v48  ;;  %v687_v55 = vand.u32 4294901760, %v6277_v43  ;;  %v694_v57 = vand.u32 4294901760, %v6282_v50 }
  0x56   :  { %v6295_v56 = vsub.f32 %v596_v47, %v6284_v51  ;;  %v5615_v58 = vpack.c.bf16 %v210_v42, %v203_v39  ;;  %v701_v60 = vand.u32 4294901760, %v6288_v53  ;;  %5646 = vmatpush3.bf16.msra.mxu1 %v6286_v52  ;;  %v5618_v5 = vpack.c.bf16 %v6223_v15, %v6221_v14 }
  0x57   :  { %5032 = vmatmul.mubr.f32.vlgmr.msra.gmra.mrb[0].mxu0 %v178_v49  ;;  %v688_v59 = vsub.f32 %v6277_v43, %v687_v55  ;;  %v682_v62 = vand.u32 4294901760, %v681_v54  ;;  %v695_v63 = vsub.f32 %v6282_v50, %v694_v57  ;;  %5647 = vmatprep.subr.bf16.mxu1 %v6057_v0  ;;  %v5621_v10 = vpack.c.bf16 %v6230_v18, %v6225_v16  ;;  %v1087_v16 = vld [vmem:[%s6871_s5 + $0x18] sm:$0xff] }
  0x58   :  { %5613 = vmatpush3.bf16.msra.mxu0 %v5612_v45  ;;  %5042 = vmatprep.mubr.msk.f32.mxu0 %vm6058_vm0, %v6059_v1  ;;  %v669_v61 = vand.u32 4294901760, %v6295_v56  ;;  %v702_v3 = vsub.f32 %v6288_v53, %v701_v60  ;;  %v5654_v12 = vpack.c.bf16 %v6277_v43, %v6270_v40  ;;  %v5657_v17 = vpack.c.bf16 %v6288_v53, %v6282_v50 }
  0x59   :  { %5614 = vmatprep.subr.bf16.mxu0 %v6057_v0  ;;  %v689_v2 = vand.u32 4294901760, %v688_v59  ;;  %v696_v8 = vand.u32 4294901760, %v695_v63  ;;  %v5630_v20 = vpack.c.bf16 %v194_v23, %v187_v22  ;;  %v5633_v14 = vpack.c.bf16 %v208_v26, %v201_v24  ;;  %v1577_v59 = vld [vmem:[#allocation4 + $0x8] sm:$0xff] }
  0x5a   :  { %v670_v4 = vsub.f32 %v6295_v56, %v669_v61  ;;  %v703_v9 = vand.u32 4294901760, %v702_v3  ;;  %v1092_v15 = vand.u32 4294901760, %v1084_v27  ;;  %v1095_v22 = vand.u32 4294901760, %v1085_v28 }
  0x5b   :  { %v5648_v7 = vpack.c.bf16 %v689_v2, %v682_v62  ;;  %v1089_v23 = vsel %vm101_vm1, %v1083_v29, 0  ;;  %v1101_v31 = vand.u32 4294901760, %v1087_v16  ;;  %v1578_v2 = vld [vmem:[#allocation4 + $0x10] sm:$0xff]  ;;  %vm4770_vm6 = vcmask 259072  }
  0x5c   :  { %5616 = vmatpush3.bf16.msra.mxu0 %v5615_v58  ;;  %v671_v6 = vand.u32 4294901760, %v670_v4  ;;  %v5651_v11 = vpack.c.bf16 %v703_v9, %v696_v8  ;;  %v6381_v18 = vand.u32 4294901760, %v1089_v23  ;;  %v6383_v24 = vsub.f32 %v1084_v27, %v1092_v15 }
  0x5d   :  { %5617 = vmatprep.subr.bf16.mxu0 %v6057_v0  ;;  %v6385_v26 = vsub.f32 %v1085_v28, %v1095_v22  ;;  %v6403_v36 = vsub.f32 %v1087_v16, %v1101_v31  ;;  %v6417_v39 = vpack.c.bf16 %v1095_v22, %v1092_v15 }
  0x5e   :  { %5098 = vmatmul.mubr.f32.vlgmr.msra.gmra.mrb[0].mxu1 %v671_v6  ;;  %v6396_v33 = vsub.f32 %v1089_v23, %v6381_v18  ;;  %v1173_v37 = vand.u32 4294901760, %v6383_v24  ;;  %v1587_v6 = vsel %vm1579_vm2, %v1578_v2, 0 }
  0x5f   :  { %5043 = vmatmul.mubr.f32.vlgmr.msra.gmra.mrb[0].mxu0 %v6232_v19  ;;  %5649 = vmatpush3.bf16.msra.mxu1 %v5648_v7  ;;  %v1180_v38 = vand.u32 4294901760, %v6385_v26  ;;  %v1194_v44 = vand.u32 4294901760, %v6403_v36 }
  0x60   :  { %5619 = vmatpush3.bf16.msra.mxu0 %v5618_v5  ;;  %5053 = vmatprep.mubr.msk.f32.mxu0 %vm6058_vm0, %v6059_v1  ;;  %v1162_v40 = vand.u32 4294901760, %v6396_v33  ;;  %v1174_v41 = vsub.f32 %v6383_v24, %v1173_v37 }
  0x61   :  { %5620 = vmatprep.subr.bf16.mxu0 %v6057_v0  ;;  %5650 = vmatprep.subr.bf16.mxu1 %v6057_v0  ;;  %v1181_v42 = vsub.f32 %v6385_v26, %v1180_v38  ;;  %v1195_v49 = vsub.f32 %v6403_v36, %v1194_v44 }
  0x62   :  { %5108 = vmatprep.mubr.msk.f32.mxu1 %vm6058_vm0, %v6059_v1  ;;  %v1163_v46 = vsub.f32 %v6396_v33, %v1162_v40 }
  0x63   :  { %5652 = vmatpush3.bf16.msra.mxu1 %v5651_v11  ;;  %v1182_v47 = vand.u32 4294901760, %v1181_v42  ;;  %v1196_v54 = vand.u32 4294901760, %v1195_v49  ;;  %v6488_v11 = vand.u32 4294901760, %v1587_v6 }
  0x64   :  { %5622 = vmatpush3.bf16.msra.mxu0 %v5621_v10  ;;  %5653 = vmatprep.subr.bf16.mxu1 %v6057_v0 }
  0x65   :  { %5623 = vmatprep.subr.bf16.mxu0 %v6057_v0  ;;  %v1680_v27 = vsub.f32 %v1587_v6, %v6488_v11 }
  0x66   :  { %5109 = vmatmul.mubr.f32.vlgmr.msra.gmra.mrb[0].mxu1 %v6284_v51 }
  0x67   :  { %5054 = vmatmul.mubr.f32.vlgmr.msra.gmra.mrb[0].mxu0 %v6242_v25  ;;  %5655 = vmatpush3.bf16.msra.mxu1 %v5654_v12  ;;  %v1086_v25 = vld [vmem:[%s6871_s5 + $0x10] sm:$0xff]  ;;  %v1681_v29 = vand.u32 4294901760, %v1680_v27 }
  0x68   :  { %5625 = vmatpush3.bf16.msra.mxu0 %v6219_v13  ;;  %5064 = vmatprep.mubr.msk.f32.mxu0 %vm6058_vm0, %v6059_v1  ;;  %v1098_v30 = vand.u32 4294901760, %v1086_v25 }
  0x69   :  { %5626 = vmatprep.subr.bf16.mxu0 %v6057_v0  ;;  %5119 = vmatprep.mubr.msk.f32.mxu1 %vm6058_vm0, %v6059_v1  ;;  %v1682_v22 = vsub.f32 %v1680_v27, %v1681_v29 }
  0x6a   :  { %5656 = vmatprep.subr.bf16.mxu1 %v6057_v0  ;;  %v6401_v35 = vsub.f32 %v1086_v25, %v1098_v30  ;;  %v5681_v45 = vpack.c.bf16 %v1101_v31, %v1098_v30 }
  0x6b   :  { %5658 = vmatpush3.bf16.msra.mxu1 %v5657_v17 }
  0x6c   :  { %5628 = vmatpush3.bf16.msra.mxu0 %v6235_v21  ;;  %5659 = vmatprep.subr.bf16.mxu1 %v6057_v0  ;;  %v1187_v43 = vand.u32 4294901760, %v6401_v35 }
  0x6d   :  { %5629 = vmatprep.subr.bf16.mxu0 %v6057_v0 }
  0x6e   :  { %5120 = vmatmul.mubr.f32.vlgmr.msra.gmra.mrb[0].mxu1 %v6295_v56  ;;  %v5705_v56 = vpack.c.bf16 %v1194_v44, %v1187_v43 }
  0x6f   :  { %5065 = vmatmul.mubr.f32.vlgmr.msra.gmra.mrb[0].mxu0 %v176_v32  ;;  %5661 = vmatpush3.bf16.msra.mxu1 %v6261_v34  ;;  %v5666_v32 = vpack.c.bf16 %v687_v55, %v680_v48  ;;  %v1188_v48 = vsub.f32 %v6401_v35, %v1187_v43  ;;  %v6563_v43 = vld [vmem:[#allocation6] sm:$0xff] }
  0x70   :  { %5631 = vmatpush3.bf16.msra.mxu0 %v5630_v20  ;;  %5075 = vmatprep.mubr.msk.f32.mxu0 %vm6058_vm0, %v6059_v1 }
  0x71   :  { %5632 = vmatprep.subr.bf16.mxu0 %v6057_v0  ;;  %5130 = vmatprep.mubr.msk.f32.mxu1 %vm6058_vm0, %v6059_v1  ;;  %v1189_v53 = vand.u32 4294901760, %v1188_v48  ;;  %v6568_v48 = vld [vmem:[#allocation6 + $0x8] sm:$0xff] }
  0x72   :  { %5662 = vmatprep.subr.bf16.mxu1 %v6057_v0 }
  0x73   :  { %5664 = vmatpush3.bf16.msra.mxu1 %v6286_v52  ;;  %v5687_v55 = vpack.c.bf16 %v1196_v54, %v1189_v53 }
  0x74   :  { %5634 = vmatpush3.bf16.msra.mxu0 %v5633_v14  ;;  %5665 = vmatprep.subr.bf16.mxu1 %v6057_v0 }
  0x75   :  { %5635 = vmatprep.subr.bf16.mxu0 %v6057_v0 }
  0x76   :  { %5131 = vmatmul.mubr.f32.vlgmr.msra.gmra.mrb[0].mxu1 %v669_v61  ;;  %v1584_v61 = vsel %vm1579_vm2, %v1577_v59, 0 }
  0x77   :  { %5076 = vmatmul.mubr.f32.vlgmr.msra.gmra.mrb[0].mxu0 %v6232_v19  ;;  %5667 = vmatpush3.bf16.msra.mxu1 %v5666_v32  ;;  %v6483_v63 = vand.u32 4294901760, %v1584_v61 }
  0x78   :  { %5637 = vmatpush3.bf16.msra.mxu0 %v6219_v13  ;;  %5086 = vmatprep.mubr.msk.f32.mxu0 %vm6058_vm0, %v6059_v1  ;;  %v5669_v13 = vpack.c.bf16 %v701_v60, %v694_v57  ;;  %v1576_v57 = vld [vmem:[#allocation4] sm:$0xff] }
  0x79   :  { %5638 = vmatprep.subr.bf16.mxu0 %v6057_v0  ;;  %5141 = vmatprep.mubr.msk.f32.mxu1 %vm6058_vm0, %v6059_v1  ;;  %v1581_v58 = vsel %vm1579_vm2, %v1576_v57, 0  ;;  %v1670_v4 = vsub.f32 %v1584_v61, %v6483_v63 }
  0x7a   :  { %5668 = vmatprep.subr.bf16.mxu1 %v6057_v0  ;;  %v6479_v60 = vand.u32 4294901760, %v1581_v58 }
  0x7b   :  { %5670 = vmatpush3.bf16.msra.mxu1 %v5669_v13  ;;  %v1671_v7 = vand.u32 4294901760, %v1670_v4 }
  0x7c   :  { %5640 = vmatpush3.bf16.msra.mxu0 %v6235_v21  ;;  %5671 = vmatprep.subr.bf16.mxu1 %v6057_v0  ;;  %v1175_v21 = vand.u32 4294901760, %v1174_v41  ;;  %v1660_v62 = vsub.f32 %v1581_v58, %v6479_v60 }
  0x7d   :  { %5677 = vmatprep.subr.bf16.mxu0 %v6057_v0  ;;  %v1672_v17 = vsub.f32 %v1670_v4, %v1671_v7 }
  0x7e   :  { %5142 = vmatmul.mubr.f32.vlgmr.msra.gmra.mrb[0].mxu1 %v6284_v51  ;;  %v5684_v50 = vpack.c.bf16 %v1182_v47, %v1175_v21  ;;  %v1661_v3 = vand.u32 4294901760, %v1660_v62 }
  0x7f   :  { %5087 = vmatmul.mubr.f32.vlgmr.msra.gmra.mrb[0].mxu0 %v6232_v19  ;;  %5673 = vmatpush3.bf16.msra.mxu1 %v6261_v34  ;;  %v1164_v19 = vand.u32 4294901760, %v1163_v46  ;;  %v5690_v34 = vpack.c.bf16 %v6385_v26, %v6383_v24  ;;  %v1673_v14 = vand.u32 4294901760, %v1672_v17 }
  0x80   :  { %5679 = vmatpush3.bf16.msra.mxu0 %v6417_v39  ;;  %5163 = vmatprep.mubr.msk.f32.mxu0 %vm6058_vm0, %v6059_v1  ;;  %v1662_v5 = vsub.f32 %v1660_v62, %v1661_v3 }
  0x81   :  { %5680 = vmatprep.subr.bf16.mxu0 %v6057_v0  ;;  %5152 = vmatprep.mubr.msk.f32.mxu1 %vm6058_vm0, %v6059_v1 }
  0x82   :  { %5674 = vmatprep.subr.bf16.mxu1 %v6057_v0  ;;  %v1663_v12 = vand.u32 4294901760, %v1662_v5 }
  0x83   :  { %5676 = vmatpush3.bf16.msra.mxu1 %v6286_v52  ;;  %v5693_v52 = vpack.c.bf16 %v6403_v36, %v6401_v35 }
  0x84   :  { %5682 = vmatpush3.bf16.msra.mxu0 %v5681_v45  ;;  %5232 = vmatprep.subr.mxu1 %v6059_v1 }
  0x85   :  { %5683 = vmatprep.subr.bf16.mxu0 %v6057_v0 }
  0x86   :  { %5153 = vmatmul.mubr.f32.vlgmr.msra.gmra.mrb[0].mxu1 %v6284_v51  ;;  %v5702_v51 = vpack.c.bf16 %v1180_v38, %v1173_v37 }
  0x87   :  { %5164 = vmatmul.mubr.f32.vlgmr.msra.gmra.mrb[2].mxu0 %v1164_v19  ;;  %5234 = vmatprep.mubr.msk.f32.mxu1 %vm6058_vm0, %v6059_v1 }
  0x88   :  { %5685 = vmatpush3.bf16.msra.mxu0 %v5684_v50  ;;  %5174 = vmatprep.mubr.msk.f32.mxu0 %vm6058_vm0, %v6059_v1 }
  0x89   :  { %5686 = vmatprep.subr.bf16.mxu0 %v6057_v0 }
  0x8c   :  { %5688 = vmatpush3.bf16.msra.mxu0 %v5687_v55 }
  0x8d   :  { %5689 = vmatprep.subr.bf16.mxu0 %v6057_v0 }
  0x8f   :  { %5175 = vmatmul.mubr.f32.vlgmr.msra.gmra.mrb[2].mxu0 %v6381_v18 }
  0x90   :  { %5691 = vmatpush3.bf16.msra.mxu0 %v5690_v34  ;;  %5185 = vmatprep.mubr.msk.f32.mxu0 %vm6058_vm0, %v6059_v1 }
  0x91   :  { %5692 = vmatprep.subr.bf16.mxu0 %v6057_v0 }
  0x94   :  { %5694 = vmatpush3.bf16.msra.mxu0 %v5693_v52 }
  0x95   :  { %5695 = vmatprep.subr.bf16.mxu0 %v6057_v0 }
  0x97   :  { %5186 = vmatmul.mubr.f32.vlgmr.msra.gmra.mrb[2].mxu0 %v6396_v33  ;;  %v2711_v33 = vld [vmem:[%s6877_s11] sm:$0x3f] }
  0x98   :  { %5697 = vmatpush3.bf16.msra.mxu0 %v6417_v39  ;;  %5196 = vmatprep.mubr.msk.f32.mxu0 %vm6058_vm0, %v6059_v1  ;;  %v6544_v35 = vsel %vm1589_vm3, %v2711_v33, 0 }
  0x99   :  { %5698 = vmatprep.subr.bf16.mxu0 %v6057_v0  ;;  %v6548_v36 = vand.u32 4294901760, %v6544_v35 }
  0x9c   :  { %5700 = vmatpush3.bf16.msra.mxu0 %v5681_v45 }
  0x9d   :  { %5701 = vmatprep.subr.bf16.mxu0 %v6057_v0 }
  0x9f   :  { %5197 = vmatmul.mubr.f32.vlgmr.msra.gmra.mrb[2].mxu0 %v1162_v40 }
  0xa0   :  { %5703 = vmatpush3.bf16.msra.mxu0 %v5702_v51  ;;  %5207 = vmatprep.mubr.msk.f32.mxu0 %vm6058_vm0, %v6059_v1  ;;  %v6575_v51 = vld [vmem:[#allocation6 + $0x10] sm:$0xff] }
  0xa1   :  { %5704 = vmatprep.subr.bf16.mxu0 %v6057_v0 }
  0xa4   :  { %5706 = vmatpush3.bf16.msra.mxu0 %v5705_v56 }
  0xa5   :  { %5707 = vmatprep.subr.bf16.mxu0 %v6057_v0 }
  0xa7   :  { %5208 = vmatmul.mubr.f32.vlgmr.msra.gmra.mrb[2].mxu0 %v6381_v18 }
  0xa8   :  { %5709 = vmatpush3.bf16.msra.mxu0 %v6417_v39  ;;  %5218 = vmatprep.mubr.msk.f32.mxu0 %vm6058_vm0, %v6059_v1 }
  0xa9   :  { %5710 = vmatprep.subr.bf16.mxu0 %v6057_v0 }
  0xac   :  { %5712 = vmatpush3.bf16.msra.mxu0 %v5681_v45 }
  0xad   :  { %5221 = vmatprep.subr.mxu0 %v6059_v1 }
  0xaf   :  { %5219 = vmatmul.mubr.f32.vlgmr.msra.gmra.mrb[2].mxu0 %v6381_v18  ;;  %v1683_v18 = vand.u32 4294901760, %v1682_v22  ;;  %v2132_v22 = vld [vmem:[%s6875_s9 + $0x8] sm:$0xff] }
  0xb0   :  { %5223 = vmatprep.mubr.msk.f32.mxu0 %vm6058_vm0, %v6059_v1 }
 0x152   :  { %v586_v8 = vpop.f32.mrb[0].mxu0 }
 0x153   :  { %v1591_v9 = vsel %vm1589_vm3, %v586_v8, 0  ;;  %v5088_v10 = vpop.f32.mrb[1].mxu0 }
 0x154   :  { %v1594_v20 = vand.u32 4294901760, %v1591_v9 }
 0x156   :  { %v1691_v28 = vsub.f32 %v1591_v9, %v1594_v20  ;;  %5222 = vmatpush3.msra.mxu0 %v1594_v20 }
 0x157   :  { %5224 = vmatmul.mubr.f32.vlgmr.msra.gmra.mrb[4].mxu0 %v1663_v12  ;;  %5287 = vmatprep.subr.mxu0 %v6059_v1 }
 0x158   :  { %v1692_v15 = vand.u32 4294901760, %v1691_v28  ;;  %5226 = vmatprep.mubr.msk.f32.mxu0 %vm6058_vm0, %v6059_v1 }
 0x159   :  { %v1079_v16 = vpop.f32.mrb[0].mxu1 }
 0x15a   :  { %v1693_v23 = vsub.f32 %v1691_v28, %v1692_v15  ;;  %v6497_v24 = vsel %vm101_vm1, %v1079_v16, 0  ;;  %v5154_v26 = vpop.f32.mrb[1].mxu1 }
 0x15b   :  { %5227 = vmatmul.mubr.f32.gmra.mrb[6].mxu0 %v1673_v14  ;;  %v6504_v30 = vand.u32 4294901760, %v6497_v24 }
 0x15c   :  { %v1694_v25 = vand.u32 4294901760, %v1693_v23  ;;  %5229 = vmatprep.mubr.msk.f32.mxu0 %vm6058_vm0, %v6059_v1 }
 0x15d   :  { %5288 = vmatpush3.xpose.msra.mxu0 %v6504_v30  ;;  %v2244_v46 = vsub.f32 %v6497_v24, %v6504_v30  ;;  %v2133_v24 = vld [vmem:[%s6875_s9 + $0x10] sm:$0xff] }
 0x15e   :  { %5233 = vmatpush3.msra.mxu1 %v1694_v25  ;;  %5298 = vmatprep.subr.mxu0 %v6059_v1 }
 0x15f   :  { %5235 = vmatmul.mubr.f32.vlgmr.msra.gmra.mrb[2].mxu1 %v6479_v60  ;;  %5243 = vmatprep.subr.mxu1 %v6059_v1  ;;  %v2245_v54 = vand.u32 4294901760, %v2244_v46 }
 0x160   :  { %5244 = vmatpush3.msra.mxu1 %v1691_v28  ;;  %5237 = vmatprep.mubr.msk.f32.mxu1 %vm6058_vm0, %v6059_v1  ;;  %v2131_v28 = vld [vmem:[%s6875_s9] sm:$0xff] }
 0x161   :  { %5254 = vmatprep.subr.mxu1 %v6059_v1  ;;  %5230 = vmatmul.mubr.f32.gmra.mrb[8].mxu0 %v1683_v18  ;;  %v2246_v61 = vsub.f32 %v2244_v46, %v2245_v54 }
 0x162   :  { %5289 = vmatprep.mubr.msk.f32.mxu0 %vm6058_vm0, %v6059_v1 }
 0x163   :  { %5238 = vmatmul.mubr.f32.gmra.mrb[4].mxu1 %v6483_v63 }
 0x164   :  { %5240 = vmatprep.mubr.msk.f32.mxu1 %vm6058_vm0, %v6059_v1 }
 0x167   :  { %5241 = vmatmul.mubr.f32.gmra.mrb[6].mxu1 %v6488_v11 }
 0x168   :  { %5245 = vmatprep.mubr.msk.f32.mxu1 %vm6058_vm0, %v6059_v1 }
 0x16b   :  { %5246 = vmatmul.mubr.f32.vlgmr.msra.gmra.mrb[2].mxu1 %v1660_v62 }
 0x16c   :  { %5255 = vmatpush3.msra.mxu1 %v1594_v20  ;;  %5248 = vmatprep.mubr.msk.f32.mxu1 %vm6058_vm0, %v6059_v1 }
 0x16d   :  { %5265 = vmatprep.subr.mxu1 %v6059_v1 }
 0x16f   :  { %5249 = vmatmul.mubr.f32.gmra.mrb[4].mxu1 %v1670_v4 }
 0x170   :  { %5251 = vmatprep.mubr.msk.f32.mxu1 %vm6058_vm0, %v6059_v1 }
 0x173   :  { %5252 = vmatmul.mubr.f32.gmra.mrb[6].mxu1 %v1680_v27 }
 0x174   :  { %5256 = vmatprep.mubr.msk.f32.mxu1 %vm6058_vm0, %v6059_v1 }
 0x177   :  { %5257 = vmatmul.mubr.f32.vlgmr.msra.gmra.mrb[2].mxu1 %v1661_v3 }
 0x178   :  { %5266 = vmatpush3.msra.mxu1 %v1692_v15  ;;  %5259 = vmatprep.mubr.msk.f32.mxu1 %vm6058_vm0, %v6059_v1 }
 0x179   :  { %5276 = vmatprep.subr.mxu1 %v6059_v1 }
 0x17b   :  { %5260 = vmatmul.mubr.f32.gmra.mrb[4].mxu1 %v1671_v7  ;;  %v2247_v7 = vand.u32 4294901760, %v2246_v61 }
 0x17c   :  { %5262 = vmatprep.mubr.msk.f32.mxu1 %vm6058_vm0, %v6059_v1 }
 0x17f   :  { %5263 = vmatmul.mubr.f32.gmra.mrb[6].mxu1 %v1681_v29 }
 0x180   :  { %5267 = vmatprep.mubr.msk.f32.mxu1 %vm6058_vm0, %v6059_v1 }
 0x182   :  { %v6531_v31 = vpop.f32.mrb[2].mxu0 }
 0x183   :  { %5268 = vmatmul.mubr.f32.vlgmr.msra.gmra.mrb[2].mxu1 %v6479_v60  ;;  %v5220_v32 = vpop.f32.mrb[3].mxu0 }
 0x184   :  { %5277 = vmatpush3.msra.mxu1 %v1594_v20  ;;  %5270 = vmatprep.mubr.msk.f32.mxu1 %vm6058_vm0, %v6059_v1  ;;  %v3261_v20 = vsel %vm1589_vm3, %v6531_v31, 0 }
 0x185   :  { %5353 = vmatprep.subr.mxu1 %v6059_v1  ;;  %v6621_v27 = vand.u32 4294901760, %v3261_v20 }
 0x187   :  { %5271 = vmatmul.mubr.f32.gmra.mrb[4].mxu1 %v6483_v63 }
 0x188   :  { %5273 = vmatprep.mubr.msk.f32.mxu1 %vm6058_vm0, %v6059_v1 }
 0x18b   :  { %5274 = vmatmul.mubr.f32.gmra.mrb[6].mxu1 %v6488_v11 }
 0x18c   :  { %5278 = vmatprep.mubr.msk.f32.mxu1 %vm6058_vm0, %v6059_v1 }
 0x18f   :  { %5279 = vmatmul.mubr.f32.vlgmr.msra.gmra.mrb[2].mxu1 %v6479_v60 }
 0x190   :  { %5281 = vmatprep.mubr.msk.f32.mxu1 %vm6058_vm0, %v6059_v1  ;;  %5354 = vmatpush3.msra.mxu1 %v6548_v36 }
 0x191   :  { %5364 = vmatprep.subr.mxu1 %v6059_v1 }
 0x193   :  { %5282 = vmatmul.mubr.f32.gmra.mrb[4].mxu1 %v6483_v63 }
 0x194   :  { %5284 = vmatprep.mubr.msk.f32.mxu1 %vm6058_vm0, %v6059_v1 }
 0x197   :  { %5285 = vmatmul.mubr.f32.gmra.mrb[6].mxu1 %v6488_v11 }
 0x198   :  { %5355 = vmatprep.mubr.msk.f32.mxu1 %vm6058_vm0, %v6059_v1 }
 0x22a   :  { %v1665_v37 = vpop.f32.mrb[4].mxu0 }
 0x22b   :  { %v5225_v38 = vpop.f32.mrb[5].mxu0 }
 0x22e   :  { %v1675_v13 = vpop.f32.mrb[6].mxu0 }
 0x22f   :  { %v5228_v39 = vpop.f32.mrb[7].mxu0 }
 0x234   :  { %v1685_v40 = vpop.f32.mrb[8].mxu0 }
 0x235   :  { %v5231_v41 = vpop.f32.mrb[9].mxu0 }
 0x262   :  { %v2109_v42 = vpop.f32.mrb[2].mxu1 }
 0x263   :  { %v5767_v44 = vadd.f32 %v2109_v42, %v1665_v37  ;;  %v5280_v45 = vpop.f32.mrb[3].mxu1 }
 0x265   :  { %v2128_v21 = vmul.f32 %v5767_v44, %v6563_v43 }
 0x266   :  { %v2115_v47 = vpop.f32.mrb[4].mxu1 }
 0x267   :  { %v2135_v49 = vsel %vm101_vm1, %v2128_v21, 0  ;;  %v5768_v19 = vadd.f32 %v2115_v47, %v1675_v13  ;;  %v5283_v50 = vpop.f32.mrb[5].mxu1 }
 0x268   :  { %v6571_v53 = vand.u32 4294901760, %v2135_v49 }
 0x269   :  { %v2129_v55 = vmul.f32 %v5768_v19, %v6568_v48 }
 0x26a   :  { %v2213_v34 = vsub.f32 %v2135_v49, %v6571_v53  ;;  %v2121_v52 = vpop.f32.mrb[6].mxu1 }
 0x26b   :  { %v2138_v56 = vsel %vm101_vm1, %v2129_v55, 0  ;;  %v5769_v57 = vadd.f32 %v2121_v52, %v1685_v40  ;;  %v5286_v58 = vpop.f32.mrb[7].mxu1  ;;  %v6649_v52 = vsub.f32 %v6544_v35, %v6548_v36 }
 0x26c   :  { %v2214_v59 = vand.u32 4294901760, %v2213_v34  ;;  %v2222_v60 = vand.u32 4294901760, %v2138_v56 }
 0x26d   :  { %v2130_v62 = vmul.f32 %v5769_v57, %v6575_v51  ;;  %v2823_v61 = vand.u32 4294901760, %v6649_v52 }
 0x26e   :  { %v2215_v63 = vsub.f32 %v2213_v34, %v2214_v59  ;;  %v2223_v2 = vsub.f32 %v2138_v56, %v2222_v60  ;;  %v6652_v56 = vsub.f32 %v3261_v20, %v6621_v27 }
 0x26f   :  { %v2141_v3 = vsel %vm101_vm1, %v2130_v62, 0 }
 0x270   :  { %v2216_v4 = vand.u32 4294901760, %v2215_v63  ;;  %v2232_v5 = vand.u32 4294901760, %v2141_v3  ;;  %v2224_v6 = vand.u32 4294901760, %v2223_v2  ;;  %v3362_v62 = vand.u32 4294901760, %v6652_v56 }
 0x272   :  { %v2233_v8 = vsub.f32 %v2141_v3, %v2232_v5  ;;  %5290 = vmatmul.mubr.f32.vlgmr.msra.gmra.mrb[10].mxu0 %v2216_v4  ;;  %v2225_v9 = vsub.f32 %v2223_v2, %v2224_v6 }
 0x273   :  { %5299 = vmatpush3.xpose.msra.mxu0 %v2247_v7  ;;  %5292 = vmatprep.mubr.msk.f32.mxu0 %vm6058_vm0, %v6059_v1  ;;  %v3363_v7 = vsub.f32 %v6652_v56, %v3362_v62 }
 0x274   :  { %v2226_v10 = vand.u32 4294901760, %v2225_v9  ;;  %v2234_v11 = vand.u32 4294901760, %v2233_v8  ;;  %5309 = vmatprep.subr.mxu0 %v6059_v1 }
 0x276   :  { %5293 = vmatmul.mubr.f32.gmra.mrb[12].mxu0 %v2226_v10  ;;  %v2235_v12 = vsub.f32 %v2233_v8, %v2234_v11 }
 0x277   :  { %5295 = vmatprep.mubr.msk.f32.mxu0 %vm6058_vm0, %v6059_v1 }
 0x278   :  { %v2236_v17 = vand.u32 4294901760, %v2235_v12 }
 0x27a   :  { %5296 = vmatmul.mubr.f32.gmra.mrb[14].mxu0 %v2236_v17 }
 0x27b   :  { %5300 = vmatprep.mubr.msk.f32.mxu0 %vm6058_vm0, %v6059_v1 }
 0x27e   :  { %5301 = vmatmul.mubr.f32.vlgmr.msra.gmra.mrb[10].mxu0 %v6571_v53 }
 0x27f   :  { %5310 = vmatpush3.xpose.msra.mxu0 %v2244_v46  ;;  %5303 = vmatprep.mubr.msk.f32.mxu0 %vm6058_vm0, %v6059_v1 }
 0x280   :  { %5320 = vmatprep.subr.mxu0 %v6059_v1 }
 0x282   :  { %5304 = vmatmul.mubr.f32.gmra.mrb[12].mxu0 %v2222_v60 }
 0x283   :  { %5306 = vmatprep.mubr.msk.f32.mxu0 %vm6058_vm0, %v6059_v1 }
 0x286   :  { %5307 = vmatmul.mubr.f32.gmra.mrb[14].mxu0 %v2232_v5 }
 0x287   :  { %5311 = vmatprep.mubr.msk.f32.mxu0 %vm6058_vm0, %v6059_v1 }
 0x28a   :  { %5312 = vmatmul.mubr.f32.vlgmr.msra.gmra.mrb[10].mxu0 %v2213_v34 }
 0x28b   :  { %5321 = vmatpush3.xpose.msra.mxu0 %v6504_v30  ;;  %5314 = vmatprep.mubr.msk.f32.mxu0 %vm6058_vm0, %v6059_v1 }
 0x28c   :  { %5331 = vmatprep.subr.mxu0 %v6059_v1 }
 0x28e   :  { %5315 = vmatmul.mubr.f32.gmra.mrb[12].mxu0 %v2223_v2 }
 0x28f   :  { %5317 = vmatprep.mubr.msk.f32.mxu0 %vm6058_vm0, %v6059_v1 }
 0x292   :  { %5318 = vmatmul.mubr.f32.gmra.mrb[14].mxu0 %v2233_v8 }
 0x293   :  { %5322 = vmatprep.mubr.msk.f32.mxu0 %vm6058_vm0, %v6059_v1 }
 0x296   :  { %5323 = vmatmul.mubr.f32.vlgmr.msra.gmra.mrb[10].mxu0 %v2214_v59 }
 0x297   :  { %5332 = vmatpush3.xpose.msra.mxu0 %v2245_v54  ;;  %5325 = vmatprep.mubr.msk.f32.mxu0 %vm6058_vm0, %v6059_v1 }
 0x298   :  { %5342 = vmatprep.subr.mxu0 %v6059_v1 }
 0x29a   :  { %5326 = vmatmul.mubr.f32.gmra.mrb[12].mxu0 %v2224_v6  ;;  %v2824_v6 = vsub.f32 %v6649_v52, %v2823_v61 }
 0x29b   :  { %5328 = vmatprep.mubr.msk.f32.mxu0 %vm6058_vm0, %v6059_v1 }
 0x29e   :  { %5329 = vmatmul.mubr.f32.gmra.mrb[14].mxu0 %v2234_v11 }
 0x29f   :  { %5333 = vmatprep.mubr.msk.f32.mxu0 %vm6058_vm0, %v6059_v1 }
 0x2a2   :  { %5334 = vmatmul.mubr.f32.vlgmr.msra.gmra.mrb[10].mxu0 %v6571_v53 }
 0x2a3   :  { %5343 = vmatpush3.xpose.msra.mxu0 %v6504_v30  ;;  %5336 = vmatprep.mubr.msk.f32.mxu0 %vm6058_vm0, %v6059_v1 }
 0x2a4   :  { %5419 = vmatprep.subr.mxu0 %v6059_v1 }
 0x2a6   :  { %5337 = vmatmul.mubr.f32.gmra.mrb[12].mxu0 %v2222_v60 }
 0x2a7   :  { %5339 = vmatprep.mubr.msk.f32.mxu0 %vm6058_vm0, %v6059_v1 }
 0x2aa   :  { %5340 = vmatmul.mubr.f32.gmra.mrb[14].mxu0 %v2232_v5 }
 0x2ab   :  { %5344 = vmatprep.mubr.msk.f32.mxu0 %vm6058_vm0, %v6059_v1 }
 0x2ae   :  { %5345 = vmatmul.mubr.f32.vlgmr.msra.gmra.mrb[10].mxu0 %v6571_v53 }
 0x2af   :  { %5420 = vmatpush3.msra.mxu0 %v6621_v27  ;;  %5347 = vmatprep.mubr.msk.f32.mxu0 %vm6058_vm0, %v6059_v1 }
 0x2b0   :  { %5430 = vmatprep.subr.mxu0 %v6059_v1 }
 0x2b2   :  { %5348 = vmatmul.mubr.f32.gmra.mrb[12].mxu0 %v2222_v60 }
 0x2b3   :  { %5350 = vmatprep.mubr.msk.f32.mxu0 %vm6058_vm0, %v6059_v1 }
 0x2b6   :  { %5351 = vmatmul.mubr.f32.gmra.mrb[14].mxu0 %v2232_v5 }
 0x2b7   :  { %5421 = vmatprep.mubr.msk.f32.mxu0 %vm6058_vm0, %v6059_v1 }
 0x381   :  { %v2662_v29 = vpop.f32.mrb[10].mxu0 }
 0x382   :  { %v5770_v14 = vadd.f32 %v2662_v29, %v2131_v28  ;;  %v5346_v15 = vpop.f32.mrb[11].mxu0  ;;  %v2825_v28 = vand.u32 4294901760, %v2824_v6  ;;  %v3364_v29 = vand.u32 4294901760, %v3363_v7 }
 0x384   :  { %v2678_v23 = vsel %vm1579_vm2, %v5770_v14, -inf }
 0x385   :  { %2679 = vmax.xlane.f32.xlu0 %v2678_v23  ;;  %v2668_v25 = vpop.f32.mrb[12].mxu0 }
 0x386   :  { %v5771_v16 = vadd.f32 %v2668_v25, %v2132_v22  ;;  %v5349_v18 = vpop.f32.mrb[13].mxu0 }
 0x388   :  { %v2681_v26 = vsel %vm1579_vm2, %v5771_v16, -inf }
 0x389   :  { %2682 = vmax.xlane.f32.xlu0 %v2681_v26  ;;  %v2674_v30 = vpop.f32.mrb[14].mxu0 }
 0x38a   :  { %v5772_v31 = vadd.f32 %v2674_v30, %v2133_v24  ;;  %v5352_v32 = vpop.f32.mrb[15].mxu0 }
 0x38c   :  { %v2684_v33 = vsel %vm1579_vm2, %v5772_v31, -inf }
 0x38d   :  { %2685 = vmax.xlane.f32.xlu1 %v2684_v33 }
 0x412   :  { %v2680_v37 = vpop.xlane.xlu0 %2679 }
 0x413   :  { %v2687_v38 = vsub.f32 %v5770_v14, %v2680_v37 }
 0x415   :  { %v2690_v13 = vmul.f32 1.442695, %v2687_v38 }
 0x416   :  { %v2683_v39 = vpop.xlane.xlu0 %2682 }
 0x417   :  { %5945 = vpow2.f32 %v2690_v13  ;;  %v2688_v40 = vsub.f32 %v5771_v16, %v2683_v39 }
 0x419   :  { %v2692_v41 = vmul.f32 1.442695, %v2688_v40 }
 0x41a   :  { %v2686_v42 = vpop.xlane.xlu1 %2685 }
 0x41b   :  { %5947 = vpow2.f32 %v2692_v41  ;;  %v2689_v44 = vsub.f32 %v5772_v31, %v2686_v42 }
 0x41d   :  { %v2694_v45 = vmul.f32 1.442695, %v2689_v44 }
 0x41f   :  { %5949 = vpow2.f32 %v2694_v45 }
 0x421   :  { %v5946_v46 = vpop.eup %5945 }
 0x422   :  { %v2696_v21 = vsel %vm1579_vm2, %v5946_v46, 0.0 }
 0x423   :  { %2697 = vadd.xlane.f32.xlu1 %v2696_v21 }
 0x425   :  { %v5948_v47 = vpop.eup %5947 }
 0x426   :  { %v2699_v49 = vsel %vm1579_vm2, %v5948_v47, 0.0 }
 0x427   :  { %2700 = vadd.xlane.f32.xlu0 %v2699_v49 }
 0x429   :  { %v5950_v19 = vpop.eup %5949 }
 0x42a   :  { %v2702_v50 = vsel %vm1579_vm2, %v5950_v19, 0.0 }
 0x42b   :  { %2703 = vadd.xlane.f32.xlu1 %v2702_v50 }
 0x4b0   :  { %v2698_v53 = vpop.xlane.xlu1 %2697 }
 0x4b1   :  { %5951 = vrcp.f32 %v2698_v53 }
 0x4b4   :  { %v2701_v54 = vpop.xlane.xlu0 %2700 }
 0x4b5   :  { %5953 = vrcp.f32 %v2701_v54 }
 0x4b8   :  { %v2704_v55 = vpop.xlane.xlu1 %2703 }
 0x4b9   :  { %5955 = vrcp.f32 %v2704_v55 }
 0x4bb   :  { %v5952_v34 = vpop.eup %5951 }
 0x4bc   :  { %v2708_v57 = vmul.f32 %v5952_v34, %v5946_v46 }
 0x4be   :  { %v2713_v58 = vsel %vm1579_vm2, %v2708_v57, 0 }
 0x4bf   :  { %v5954_v59 = vpop.eup %5953  ;;  %v6655_v60 = vand.u32 4294901760, %v2713_v58 }
 0x4c0   :  { %v2709_v63 = vmul.f32 %v5954_v59, %v5948_v47 }
 0x4c1   :  { %v2791_v2 = vsub.f32 %v2713_v58, %v6655_v60 }
 0x4c2   :  { %v2716_v3 = vsel %vm1579_vm2, %v2709_v63, 0 }
 0x4c3   :  { %v5956_v35 = vpop.eup %5955  ;;  %v6661_v4 = vand.u32 4294901760, %v2716_v3  ;;  %v6663_v5 = vand.u32 4294901760, %v2791_v2 }
 0x4c4   :  { %v2710_v8 = vmul.f32 %v5956_v35, %v5950_v19  ;;  %v4279_v35 = vld [vmem:[#allocation2 + $0x8] sm:$0xff] }
 0x4c5   :  { %v2793_v9 = vsub.f32 %v2791_v2, %v6663_v5  ;;  %v2801_v10 = vsub.f32 %v2716_v3, %v6661_v4  ;;  %v4278_v3 = vld [vmem:[#allocation2] sm:$0xff] }
 0x4c6   :  { %v2719_v11 = vsel %vm1579_vm2, %v2710_v8, 0 }
 0x4c7   :  { %v6674_v12 = vand.u32 4294901760, %v2719_v11  ;;  %v2794_v17 = vand.u32 4294901760, %v2793_v9  ;;  %v6676_v20 = vand.u32 4294901760, %v2801_v10  ;;  %v4280_v9 = vld [vmem:[#allocation2 + $0x10] sm:$0xff] }
 0x4c9   :  { %5356 = vmatmul.mubr.f32.vlgmr.msra.gmra.mrb[8].mxu1 %v2794_v17  ;;  %5422 = vmatmul.mubr.f32.vlgmr.msra.gmra.mrb[16].mxu0 %v2794_v17  ;;  %v2803_v14 = vsub.f32 %v2801_v10, %v6676_v20  ;;  %v2811_v15 = vsub.f32 %v2719_v11, %v6674_v12  ;;  %v4292_v11 = vand.u32 4294901760, %v4280_v9 }
 0x4ca   :  { %5431 = vmatpush3.msra.mxu0 %v3364_v29  ;;  %5358 = vmatprep.mubr.msk.f32.mxu1 %vm6058_vm0, %v6059_v1 }
 0x4cb   :  { %5424 = vmatprep.mubr.msk.f32.mxu0 %vm6058_vm0, %v6059_v1  ;;  %v2804_v22 = vand.u32 4294901760, %v2803_v14  ;;  %v2812_v23 = vand.u32 4294901760, %v2811_v15  ;;  %5365 = vmatpush3.msra.mxu1 %v2825_v28  ;;  %v4380_v29 = vsub.f32 %v4280_v9, %v4292_v11 }
 0x4cc   :  { %5441 = vmatprep.subr.mxu0 %v6059_v1  ;;  %5375 = vmatprep.subr.mxu1 %v6059_v1 }
 0x4cd   :  { %5359 = vmatmul.mubr.f32.gmra.mrb[10].mxu1 %v2804_v22  ;;  %5425 = vmatmul.mubr.f32.gmra.mrb[18].mxu0 %v2804_v22  ;;  %v2813_v25 = vsub.f32 %v2811_v15, %v2812_v23 }
 0x4ce   :  { %5361 = vmatprep.mubr.msk.f32.mxu1 %vm6058_vm0, %v6059_v1  ;;  %5427 = vmatprep.mubr.msk.f32.mxu0 %vm6058_vm0, %v6059_v1 }
 0x4cf   :  { %v2814_v16 = vand.u32 4294901760, %v2813_v25  ;;  %v4381_v25 = vand.u32 4294901760, %v4380_v29 }
 0x4d1   :  { %5362 = vmatmul.mubr.f32.gmra.mrb[12].mxu1 %v2814_v16  ;;  %5428 = vmatmul.mubr.f32.gmra.mrb[20].mxu0 %v2814_v16 }
 0x4d2   :  { %5366 = vmatprep.mubr.msk.f32.mxu1 %vm6058_vm0, %v6059_v1  ;;  %5432 = vmatprep.mubr.msk.f32.mxu0 %vm6058_vm0, %v6059_v1 }
 0x4d5   :  { %5367 = vmatmul.mubr.f32.vlgmr.msra.gmra.mrb[8].mxu1 %v6655_v60  ;;  %5433 = vmatmul.mubr.f32.vlgmr.msra.gmra.mrb[16].mxu0 %v6655_v60 }
 0x4d6   :  { %5442 = vmatpush3.msra.mxu0 %v6652_v56  ;;  %5369 = vmatprep.mubr.msk.f32.mxu1 %vm6058_vm0, %v6059_v1 }
 0x4d7   :  { %5435 = vmatprep.mubr.msk.f32.mxu0 %vm6058_vm0, %v6059_v1  ;;  %5376 = vmatpush3.msra.mxu1 %v6649_v52 }
 0x4d8   :  { %5452 = vmatprep.subr.mxu0 %v6059_v1  ;;  %5386 = vmatprep.subr.mxu1 %v6059_v1 }
 0x4d9   :  { %5370 = vmatmul.mubr.f32.gmra.mrb[10].mxu1 %v6661_v4  ;;  %5436 = vmatmul.mubr.f32.gmra.mrb[18].mxu0 %v6661_v4 }
 0x4da   :  { %5372 = vmatprep.mubr.msk.f32.mxu1 %vm6058_vm0, %v6059_v1  ;;  %5438 = vmatprep.mubr.msk.f32.mxu0 %vm6058_vm0, %v6059_v1 }
 0x4dd   :  { %5373 = vmatmul.mubr.f32.gmra.mrb[12].mxu1 %v6674_v12  ;;  %5439 = vmatmul.mubr.f32.gmra.mrb[20].mxu0 %v6674_v12 }
 0x4de   :  { %5377 = vmatprep.mubr.msk.f32.mxu1 %vm6058_vm0, %v6059_v1  ;;  %5443 = vmatprep.mubr.msk.f32.mxu0 %vm6058_vm0, %v6059_v1 }
 0x4e1   :  { %5378 = vmatmul.mubr.f32.vlgmr.msra.gmra.mrb[8].mxu1 %v2791_v2  ;;  %5444 = vmatmul.mubr.f32.vlgmr.msra.gmra.mrb[16].mxu0 %v2791_v2 }
 0x4e2   :  { %5453 = vmatpush3.msra.mxu0 %v6621_v27  ;;  %5380 = vmatprep.mubr.msk.f32.mxu1 %vm6058_vm0, %v6059_v1 }
 0x4e3   :  { %5446 = vmatprep.mubr.msk.f32.mxu0 %vm6058_vm0, %v6059_v1  ;;  %5387 = vmatpush3.msra.mxu1 %v6548_v36 }
 0x4e4   :  { %5463 = vmatprep.subr.mxu0 %v6059_v1  ;;  %5397 = vmatprep.subr.mxu1 %v6059_v1 }
 0x4e5   :  { %5381 = vmatmul.mubr.f32.gmra.mrb[10].mxu1 %v2801_v10  ;;  %5447 = vmatmul.mubr.f32.gmra.mrb[18].mxu0 %v2801_v10  ;;  %v4281_v10 = vld [vmem:[#allocation2 + $0x18] sm:$0xff] }
 0x4e6   :  { %5383 = vmatprep.mubr.msk.f32.mxu1 %vm6058_vm0, %v6059_v1  ;;  %5449 = vmatprep.mubr.msk.f32.mxu0 %vm6058_vm0, %v6059_v1 }
 0x4e9   :  { %5384 = vmatmul.mubr.f32.gmra.mrb[12].mxu1 %v2811_v15  ;;  %5450 = vmatmul.mubr.f32.gmra.mrb[20].mxu0 %v2811_v15 }
 0x4ea   :  { %5388 = vmatprep.mubr.msk.f32.mxu1 %vm6058_vm0, %v6059_v1  ;;  %5454 = vmatprep.mubr.msk.f32.mxu0 %vm6058_vm0, %v6059_v1 }
 0x4ed   :  { %5389 = vmatmul.mubr.f32.vlgmr.msra.gmra.mrb[8].mxu1 %v6663_v5  ;;  %5455 = vmatmul.mubr.f32.vlgmr.msra.gmra.mrb[16].mxu0 %v6663_v5  ;;  %v4289_v5 = vand.u32 4294901760, %v4279_v35 }
 0x4ee   :  { %5464 = vmatpush3.msra.mxu0 %v3362_v62  ;;  %5391 = vmatprep.mubr.msk.f32.mxu1 %vm6058_vm0, %v6059_v1 }
 0x4ef   :  { %5457 = vmatprep.mubr.msk.f32.mxu0 %vm6058_vm0, %v6059_v1  ;;  %5398 = vmatpush3.msra.mxu1 %v2823_v61  ;;  %v4373_v8 = vsub.f32 %v4279_v35, %v4289_v5 }
 0x4f0   :  { %5474 = vmatprep.subr.mxu0 %v6059_v1  ;;  %5408 = vmatprep.subr.mxu1 %v6059_v1 }
 0x4f1   :  { %5392 = vmatmul.mubr.f32.gmra.mrb[10].mxu1 %v6676_v20  ;;  %5458 = vmatmul.mubr.f32.gmra.mrb[18].mxu0 %v6676_v20  ;;  %v4374_v20 = vand.u32 4294901760, %v4373_v8 }
 0x4f2   :  { %5394 = vmatprep.mubr.msk.f32.mxu1 %vm6058_vm0, %v6059_v1  ;;  %5460 = vmatprep.mubr.msk.f32.mxu0 %vm6058_vm0, %v6059_v1 }
 0x4f3   :  { %v4375_v22 = vsub.f32 %v4373_v8, %v4374_v20 }
 0x4f5   :  { %5395 = vmatmul.mubr.f32.gmra.mrb[12].mxu1 %v2812_v23  ;;  %5461 = vmatmul.mubr.f32.gmra.mrb[20].mxu0 %v2812_v23 }
 0x4f6   :  { %5399 = vmatprep.mubr.msk.f32.mxu1 %vm6058_vm0, %v6059_v1  ;;  %5465 = vmatprep.mubr.msk.f32.mxu0 %vm6058_vm0, %v6059_v1 }
 0x4f9   :  { %5400 = vmatmul.mubr.f32.vlgmr.msra.gmra.mrb[8].mxu1 %v6655_v60  ;;  %5466 = vmatmul.mubr.f32.vlgmr.msra.gmra.mrb[16].mxu0 %v6655_v60 }
 0x4fa   :  { %5475 = vmatpush3.msra.mxu0 %v6621_v27  ;;  %5402 = vmatprep.mubr.msk.f32.mxu1 %vm6058_vm0, %v6059_v1 }
 0x4fb   :  { %5468 = vmatprep.mubr.msk.f32.mxu0 %vm6058_vm0, %v6059_v1  ;;  %5409 = vmatpush3.msra.mxu1 %v6548_v36  ;;  %v3801_v36 = vld [vmem:[#allocation7] sm:$0x3f] }
 0x4fc   :  { %5713 = vmatprep.subr.bf16.mxu0 %v6057_v0  ;;  %5716 = vmatprep.subr.bf16.mxu1 %v6057_v0  ;;  %v3804_v27 = vsel %vm3802_vm4, %v3801_v36, 0  ;;  %v4376_v36 = vand.u32 4294901760, %v4375_v22 }
 0x4fd   :  { %5403 = vmatmul.mubr.f32.gmra.mrb[10].mxu1 %v6661_v4  ;;  %5469 = vmatmul.mubr.f32.gmra.mrb[18].mxu0 %v6661_v4  ;;  %v6799_v32 = vand.u32 4294901760, %v3804_v27 }
 0x4fe   :  { %5405 = vmatprep.mubr.msk.f32.mxu1 %vm6058_vm0, %v6059_v1  ;;  %5471 = vmatprep.mubr.msk.f32.mxu0 %vm6058_vm0, %v6059_v1 }
 0x4ff   :  { %v3875_v13 = vsub.f32 %v3804_v27, %v6799_v32  ;;  %v4382_v27 = vsub.f32 %v4380_v29, %v4381_v25 }
 0x501   :  { %5406 = vmatmul.mubr.f32.gmra.mrb[12].mxu1 %v6674_v12  ;;  %5472 = vmatmul.mubr.f32.gmra.mrb[20].mxu0 %v6674_v12 }
 0x502   :  { %5410 = vmatprep.mubr.msk.f32.mxu1 %vm6058_vm0, %v6059_v1  ;;  %5476 = vmatprep.mubr.msk.f32.mxu0 %vm6058_vm0, %v6059_v1 }
 0x505   :  { %5411 = vmatmul.mubr.f32.vlgmr.msra.gmra.mrb[8].mxu1 %v6655_v60  ;;  %5477 = vmatmul.mubr.f32.vlgmr.msra.gmra.mrb[16].mxu0 %v6655_v60 }
 0x506   :  { %5413 = vmatprep.mubr.msk.f32.mxu1 %vm6058_vm0, %v6059_v1  ;;  %5479 = vmatprep.mubr.msk.f32.mxu0 %vm6058_vm0, %v6059_v1 }
 0x509   :  { %5414 = vmatmul.mubr.f32.gmra.mrb[10].mxu1 %v6661_v4  ;;  %5480 = vmatmul.mubr.f32.gmra.mrb[18].mxu0 %v6661_v4  ;;  %v4286_v4 = vand.u32 4294901760, %v4278_v3 }
 0x50a   :  { %5416 = vmatprep.mubr.msk.f32.mxu1 %vm6058_vm0, %v6059_v1  ;;  %5482 = vmatprep.mubr.msk.f32.mxu0 %vm6058_vm0, %v6059_v1 }
 0x50b   :  { %v6836_v6 = vpack.c.bf16 %v4289_v5, %v4286_v4  ;;  %v4366_v7 = vsub.f32 %v4278_v3, %v4286_v4 }
 0x50d   :  { %5417 = vmatmul.mubr.f32.gmra.mrb[12].mxu1 %v6674_v12  ;;  %5483 = vmatmul.mubr.f32.gmra.mrb[20].mxu0 %v6674_v12  ;;  %v4295_v12 = vand.u32 4294901760, %v4281_v10  ;;  %v4367_v17 = vand.u32 4294901760, %v4366_v7 }
 0x50e   :  { %5500 = vmatprep.mubr.msk.f32.mxu1 %vm6058_vm0, %v6059_v1  ;;  %5491 = vmatprep.mubr.msk.f32.mxu0 %vm6058_vm0, %v6059_v1 }
 0x50f   :  { %v5735_v28 = vpack.c.bf16 %v4295_v12, %v4292_v11  ;;  %v4387_v14 = vsub.f32 %v4281_v10, %v4295_v12  ;;  %v4368_v15 = vsub.f32 %v4366_v7, %v4367_v17 }
 0x511   :  { %v4369_v23 = vand.u32 4294901760, %v4368_v15  ;;  %v4388_v16 = vand.u32 4294901760, %v4387_v14 }
 0x5d8   :  { %v3240_v18 = vpop.f32.mrb[8].mxu1  ;;  %v3779_v24 = vpop.f32.mrb[16].mxu0 }
 0x5d9   :  { %3257 = vst.msk [vmem:[%s6879_s13] sm:$0xff] %vm3256_vm5, %v3240_v18  ;;  %v3798_v26 = vmul.f32 %v3779_v24, %v6563_v43  ;;  %v5412_v30 = vpop.f32.mrb[9].mxu1  ;;  %v5478_v31 = vpop.f32.mrb[17].mxu0  ;;  %v3876_v43 = vand.u32 4294901760, %v3875_v13  ;;  %v4389_v18 = vsub.f32 %v4387_v14, %v4388_v16  ;;  %v5738_v24 = vpack.c.bf16 %v4376_v36, %v4369_v23 }
 0x5db   :  { %v3807_v33 = vand.u32 4294901760, %v3798_v26  ;;  %v3877_v47 = vsub.f32 %v3875_v13, %v3876_v43  ;;  %v4390_v30 = vand.u32 4294901760, %v4389_v18 }
 0x5dc   :  { %v3246_v37 = vpop.f32.mrb[10].mxu1  ;;  %v3785_v38 = vpop.f32.mrb[18].mxu0 }
 0x5dd   :  { %v3886_v39 = vsub.f32 %v3798_v26, %v3807_v33  ;;  %3258 = vst.msk [vmem:[%s6879_s13 + $0x8] sm:$0xff] %vm3256_vm5, %v3246_v37  ;;  %v3799_v40 = vmul.f32 %v3785_v38, %v6568_v48  ;;  %v5415_v41 = vpop.f32.mrb[11].mxu1  ;;  %v5481_v42 = vpop.f32.mrb[19].mxu0  ;;  %v3878_v56 = vand.u32 4294901760, %v3877_v47  ;;  %v4383_v26 = vand.u32 4294901760, %v4382_v27 }
 0x5de   :  { %v5756_v37 = vpack.c.bf16 %v4374_v20, %v4367_v17  ;;  %v5759_v38 = vpack.c.bf16 %v4388_v16, %v4381_v25 }
 0x5df   :  { %v3887_v44 = vand.u32 4294901760, %v3886_v39  ;;  %v3810_v45 = vand.u32 4294901760, %v3799_v40  ;;  %v5741_v31 = vpack.c.bf16 %v4390_v30, %v4383_v26 }
 0x5e0   :  { %v3252_v46 = vpop.f32.mrb[12].mxu1  ;;  %v3791_v21 = vpop.f32.mrb[20].mxu0 }
 0x5e1   :  { %v5714_v49 = vpack.c.bf16 %v3810_v45, %v3807_v33  ;;  %v3893_v19 = vsub.f32 %v3799_v40, %v3810_v45  ;;  %3259 = vst.msk [vmem:[%s6879_s13 + $0x10] sm:$0xff] %vm3256_vm5, %v3252_v46  ;;  %v3800_v50 = vmul.f32 %v3791_v21, %v6575_v51  ;;  %v5418_v53 = vpop.f32.mrb[13].mxu1  ;;  %v5484_v54 = vpop.f32.mrb[21].mxu0  ;;  %v3888_v48 = vsub.f32 %v3886_v39, %v3887_v44 }
 0x5e2   :  { %v5747_v33 = vpack.c.bf16 %v4387_v14, %v4380_v29 }
 0x5e3   :  { %v3894_v55 = vand.u32 4294901760, %v3893_v19  ;;  %v5720_v34 = vpack.c.bf16 %v3893_v19, %v3886_v39  ;;  %v3813_v52 = vand.u32 4294901760, %v3800_v50  ;;  %5715 = vmatpush3.bf16.msra.mxu0 %v5714_v49  ;;  %v3889_v60 = vand.u32 4294901760, %v3888_v48 }
 0x5e4   :  { %5489 = vmatprep.subr.mxu0 %v6059_v1 }
 0x5e5   :  { %v3895_v57 = vsub.f32 %v3893_v19, %v3894_v55  ;;  %v3900_v58 = vsub.f32 %v3800_v50, %v3813_v52  ;;  %v5726_v59 = vpack.c.bf16 %v3894_v55, %v3887_v44 }
 0x5e7   :  { %v3896_v61 = vand.u32 4294901760, %v3895_v57  ;;  %v3901_v62 = vand.u32 4294901760, %v3900_v58  ;;  %5490 = vmatpush3.msra.mxu0 %v3813_v52 }
 0x5e8   :  { %5492 = vmatmul.mubr.f32.vlgmr.msra.gmra.mrb[22].mxu0 %v3878_v56 }
 0x5e9   :  { %v3902_v63 = vsub.f32 %v3900_v58, %v3901_v62  ;;  %v5717_v51 = vpack.c.bf16 %v3896_v61, %v3889_v60 }
 0x5eb   :  { %5718 = vmatpush3.bf16.msra.mxu1 %v5717_v51  ;;  %v3903_v2 = vand.u32 4294901760, %v3902_v63 }
 0x5ec   :  { %5498 = vmatprep.subr.mxu1 %v6059_v1 }
 0x5ef   :  { %5499 = vmatpush3.msra.mxu1 %v3903_v2 }
 0x5f0   :  { %5501 = vmatmul.mubr.f32.vlgmr.msra.gmra.mrb[14].mxu1 %v6799_v32  ;;  %5719 = vmatprep.subr.bf16.mxu1 %v6057_v0 }
 0x5f1   :  { %5721 = vmatpush3.bf16.msra.mxu1 %v5720_v34  ;;  %5509 = vmatprep.mubr.msk.f32.mxu1 %vm6058_vm0, %v6059_v1 }
 0x5f2   :  { %5507 = vmatprep.subr.mxu1 %v6059_v1 }
 0x5f5   :  { %5508 = vmatpush3.msra.mxu1 %v3900_v58 }
 0x5f6   :  { %5722 = vmatprep.subr.bf16.mxu1 %v6057_v0 }
 0x5f8   :  { %5510 = vmatmul.mubr.f32.vlgmr.msra.gmra.mrb[14].mxu1 %v3875_v13 }
 0x5f9   :  { %5724 = vmatpush3.bf16.msra.mxu1 %v5714_v49  ;;  %5518 = vmatprep.mubr.msk.f32.mxu1 %vm6058_vm0, %v6059_v1 }
 0x5fa   :  { %5516 = vmatprep.subr.mxu1 %v6059_v1 }
 0x5fd   :  { %5517 = vmatpush3.msra.mxu1 %v3813_v52 }
 0x5fe   :  { %5725 = vmatprep.subr.bf16.mxu1 %v6057_v0 }
 0x600   :  { %5519 = vmatmul.mubr.f32.vlgmr.msra.gmra.mrb[14].mxu1 %v3876_v43 }
 0x601   :  { %5727 = vmatpush3.bf16.msra.mxu1 %v5726_v59  ;;  %5527 = vmatprep.mubr.msk.f32.mxu1 %vm6058_vm0, %v6059_v1 }
 0x602   :  { %5525 = vmatprep.subr.mxu1 %v6059_v1 }
 0x605   :  { %5526 = vmatpush3.msra.mxu1 %v3901_v62 }
 0x606   :  { %5728 = vmatprep.subr.bf16.mxu1 %v6057_v0 }
 0x608   :  { %5528 = vmatmul.mubr.f32.vlgmr.msra.gmra.mrb[14].mxu1 %v6799_v32 }
 0x609   :  { %5730 = vmatpush3.bf16.msra.mxu1 %v5714_v49  ;;  %5536 = vmatprep.mubr.msk.f32.mxu1 %vm6058_vm0, %v6059_v1 }
 0x60a   :  { %5534 = vmatprep.subr.mxu1 %v6059_v1 }
 0x60d   :  { %5535 = vmatpush3.msra.mxu1 %v3813_v52 }
 0x60e   :  { %5731 = vmatprep.subr.bf16.mxu1 %v6057_v0 }
 0x610   :  { %5537 = vmatmul.mubr.f32.vlgmr.msra.gmra.mrb[14].mxu1 %v6799_v32  ;;  %v5744_v32 = vpack.c.bf16 %v4373_v8, %v4366_v7 }
 0x611   :  { %5547 = vmatprep.mubr.msk.f32.mxu1 %vm6058_vm0, %v6059_v1  ;;  %5733 = vmatpush3.bf16.msra.mxu1 %v6836_v6 }
 0x612   :  { %5734 = vmatprep.subr.bf16.mxu1 %v6057_v0 }
 0x615   :  { %5736 = vmatpush3.bf16.msra.mxu1 %v5735_v28 }
 0x616   :  { %5737 = vmatprep.subr.bf16.mxu1 %v6057_v0 }
 0x6bb   :  { %v3880_v13 = vpop.f32.mrb[22].mxu0 }
 0x6bc   :  { %v5493_v39 = vpop.f32.mrb[23].mxu0 }
 0x6e3   :  { %v4274_v40 = vpop.f32.mrb[14].mxu1 }
 0x6e4   :  { %v5773_v41 = vadd.f32 %v4274_v40, %v3880_v13  ;;  %v5538_v42 = vpop.f32.mrb[15].mxu1 }
 0x6e6   :  { %v4283_v43 = vsel %vm101_vm1, %v5773_v41, 0 }
 0x6e7   :  { %v4354_v44 = vand.u32 4294901760, %v4283_v43 }
 0x6e9   :  { %v4355_v45 = vsub.f32 %v4283_v43, %v4354_v44 }
 0x6eb   :  { %v4356_v46 = vand.u32 4294901760, %v4355_v45 }
 0x6ed   :  { %v4357_v21 = vsub.f32 %v4355_v45, %v4356_v46 }
 0x6ef   :  { %v4358_v47 = vand.u32 4294901760, %v4357_v21 }
 0x6f1   :  { %5548 = vmatmul.mubr.f32.vlgmr.msra.gmra.mrb[16].mxu1 %v4358_v47 }
 0x6f2   :  { %5739 = vmatpush3.bf16.msra.mxu1 %v5738_v24  ;;  %5558 = vmatprep.mubr.msk.f32.mxu1 %vm6058_vm0, %v6059_v1 }
 0x6f3   :  { %5740 = vmatprep.subr.bf16.mxu1 %v6057_v0 }
 0x6f6   :  { %5742 = vmatpush3.bf16.msra.mxu1 %v5741_v31 }
 0x6f7   :  { %5743 = vmatprep.subr.bf16.mxu1 %v6057_v0 }
 0x6f9   :  { %5559 = vmatmul.mubr.f32.vlgmr.msra.gmra.mrb[16].mxu1 %v4354_v44 }
 0x6fa   :  { %5745 = vmatpush3.bf16.msra.mxu1 %v5744_v32  ;;  %5569 = vmatprep.mubr.msk.f32.mxu1 %vm6058_vm0, %v6059_v1 }
 0x6fb   :  { %5746 = vmatprep.subr.bf16.mxu1 %v6057_v0 }
 0x6fe   :  { %5748 = vmatpush3.bf16.msra.mxu1 %v5747_v33 }
 0x6ff   :  { %5749 = vmatprep.subr.bf16.mxu1 %v6057_v0 }
 0x701   :  { %5570 = vmatmul.mubr.f32.vlgmr.msra.gmra.mrb[16].mxu1 %v4355_v45 }
 0x702   :  { %5751 = vmatpush3.bf16.msra.mxu1 %v6836_v6  ;;  %5580 = vmatprep.mubr.msk.f32.mxu1 %vm6058_vm0, %v6059_v1 }
 0x703   :  { %5752 = vmatprep.subr.bf16.mxu1 %v6057_v0 }
 0x706   :  { %5754 = vmatpush3.bf16.msra.mxu1 %v5735_v28 }
 0x707   :  { %5755 = vmatprep.subr.bf16.mxu1 %v6057_v0 }
 0x709   :  { %5581 = vmatmul.mubr.f32.vlgmr.msra.gmra.mrb[16].mxu1 %v4356_v46 }
 0x70a   :  { %5757 = vmatpush3.bf16.msra.mxu1 %v5756_v37  ;;  %5591 = vmatprep.mubr.msk.f32.mxu1 %vm6058_vm0, %v6059_v1 }
 0x70b   :  { %5758 = vmatprep.subr.bf16.mxu1 %v6057_v0 }
 0x70e   :  { %5760 = vmatpush3.bf16.msra.mxu1 %v5759_v38 }
 0x70f   :  { %5761 = vmatprep.subr.bf16.mxu1 %v6057_v0 }
 0x711   :  { %5592 = vmatmul.mubr.f32.vlgmr.msra.gmra.mrb[16].mxu1 %v4354_v44 }
 0x712   :  { %5763 = vmatpush3.bf16.msra.mxu1 %v6836_v6  ;;  %5602 = vmatprep.mubr.msk.f32.mxu1 %vm6058_vm0, %v6059_v1 }
 0x713   :  { %5764 = vmatprep.subr.bf16.mxu1 %v6057_v0 }
 0x716   :  { %5766 = vmatpush3.bf16.msra.mxu1 %v5735_v28 }
 0x719   :  { %5603 = vmatmul.mubr.f32.vlgmr.msra.gmra.mrb[16].mxu1 %v4354_v44 }
 0x7ec   :  { %v4766_v49 = vpop.f32.mrb[16].mxu1 }
 0x7ed   :  { %4771 = vst.msk [vmem:[%s6878_s12] sm:$0x3f] %vm4770_vm6, %v4766_v49  ;;  %v5604_v19 = vpop.f32.mrb[17].mxu1 }
 0x7ee   :  { %4780 = vsyncpa [#allocation3], 1 }
 0x7ef   :  { %4781 = vsyncpa [#allocation5], 1 }
 0x7f0   :  { %4782 = vsyncpa [#allocation8], 1 }

</bundles_post_ra>
